<compile_context>
chip_gen: v7x
topology: tpu7x:2x2x1
jax: 0.10.0
libtpu: 0.0.40
codegen_flags: <defaults>
</compile_context>

<pallas_src>
import jax
import jax.numpy as jnp
from jax.experimental import pallas as pl
from jax.experimental.pallas import tpu as pltpu

# ----------------------------- small BERT config -----------------------------
VOCAB = 100
HIDDEN = 128          # stands in for 768
HEADS = 2
HEAD_DIM = HIDDEN // HEADS
LAYERS = 2
INTERMEDIATE = 256
MAX_POS = 16
TYPE_VOCAB = 2
NUM_CLASSES = 10
PAD_CLASSES = 128     # lane-dense output slab; sliced to NUM_CLASSES outside
LN_EPS = 1e-12
VMEM_LIMIT = 48 * 1024 * 1024   # headroom under v7x's 64 MiB physical VMEM


# ------------------------------ fused model kernel ----------------------------
def _layernorm(y, g, b):
    """f32 LayerNorm over the last axis.  g/b are (1, H) and broadcast."""
    mean = jnp.mean(y, axis=-1, keepdims=True)
    var = jnp.mean(jnp.square(y - mean), axis=-1, keepdims=True)
    return (y - mean) * jax.lax.rsqrt(var + LN_EPS) * g + b


def _model_kernel(emb_ref, mask_ref, embg_ref, embb_ref,
                  wqkv_ref, bqkv_ref, wo_ref, bo_ref, ln1g_ref, ln1b_ref,
                  wi_ref, bi_ref, wf_ref, bf_ref, ln2g_ref, ln2b_ref,
                  wp_ref, bp_ref, wc_ref, o_ref):
    """One batch element: emb-LN -> LAYERS x (attn + FFN) -> pooler -> classify -> L2."""
    mask = mask_ref[0]                                   # (1, S) additive key bias
    scale = 1.0 / (HEAD_DIM ** 0.5)

    # ---- embedding LayerNorm (residual-free) ----
    y = emb_ref[0].astype(jnp.float32)                   # (S, H)
    x = _layernorm(y, embg_ref[...], embb_ref[...]).astype(jnp.bfloat16)
    # TODO(synk): dropout layers omitted (eval mode / config.DROPOUT).

    # ---- encoder layers (static unroll; all weights resident in VMEM) ----
    for l in range(LAYERS):
        # --- self-attention block ---
        x_f32 = x.astype(jnp.float32)
        qkv = jnp.dot(x, wqkv_ref[l],
                      preferred_element_type=jnp.float32) + bqkv_ref[l]   # (S, 3H) f32
        # fold 1/sqrt(head_dim) into q; single bf16 cast of the whole qkv
        q_all = (qkv[:, :HIDDEN] * scale).astype(jnp.bfloat16)            # (S, H)
        kv_all = qkv[:, HIDDEN:].astype(jnp.bfloat16)                     # (S, 2H)

        ctx_parts = []
        for h in range(HEADS):                           # static unroll over heads
            q = q_all[:, h * HEAD_DIM:(h + 1) * HEAD_DIM]
            k = kv_all[:, h * HEAD_DIM:(h + 1) * HEAD_DIM]
            v = kv_all[:, HIDDEN + h * HEAD_DIM:HIDDEN + (h + 1) * HEAD_DIM]
            # scores (S, S): contract head_dim without an explicit transpose
            s = jax.lax.dot_general(q, k, (((1,), (1,)), ((), ())),
                                    preferred_element_type=jnp.float32)
            s = s + mask
            s = s - jnp.max(s, axis=-1, keepdims=True)
            p = jnp.exp(s)                               # un-normalized probs (f32)
            denom = jnp.sum(p, axis=-1, keepdims=True)   # (S, 1)
            ctx = jnp.dot(p.astype(jnp.bfloat16), v,
                          preferred_element_type=jnp.float32)             # (S, hd)
            # normalization moved off the (S,S) tile onto the (S,hd) context (EUP recip)
            ctx = ctx * pl.reciprocal(denom, approx=True)
            ctx_parts.append(ctx.astype(jnp.bfloat16))
        ctx_all = jnp.concatenate(ctx_parts, axis=-1)    # (S, H) bf16
        # single full-width output projection (contracts K = H, fills the MXU)
        attn = jnp.dot(ctx_all, wo_ref[l],
                       preferred_element_type=jnp.float32) + bo_ref[l]
        y = x_f32 + attn
        x = _layernorm(y, ln1g_ref[l], ln1b_ref[l]).astype(jnp.bfloat16)
        # TODO(synk): for long sequences, tile S flash-style and pad scores to 128 lanes.

        # --- feed-forward block ---
        x_f32 = x.astype(jnp.float32)
        hmid = jnp.dot(x, wi_ref[l],
                       preferred_element_type=jnp.float32) + bi_ref[l]    # (S, I)
        # TODO(synk): HF BERT default is exact erf-gelu; tanh approximation used here.
        hmid = jax.nn.gelu(hmid, approximate=True)
        y = jnp.dot(hmid.astype(jnp.bfloat16), wf_ref[l],
                    preferred_element_type=jnp.float32) + bf_ref[l] + x_f32
        x = _layernorm(y, ln2g_ref[l], ln2b_ref[l]).astype(jnp.bfloat16)

    # ---- pooler (CLS token = row 0) + classifier + L2 normalize ----
    cls = x[0:1, :]                                                        # (1, H)
    pooled = jnp.tanh(
        jnp.dot(cls, wp_ref[...], preferred_element_type=jnp.float32) + bp_ref[...])
    logits = jnp.dot(pooled.astype(jnp.bfloat16), wc_ref[...],
                     preferred_element_type=jnp.float32)   # (1, 128), cols >= 10 are 0
    sumsq = jnp.sum(logits * logits, axis=-1, keepdims=True)
    # F.normalize(p=2, dim=1): divide by max(norm, 1e-12)  ==  * rsqrt(max(ss, 1e-24))
    inv = jax.lax.rsqrt(jnp.maximum(sumsq, 1e-24))
    o_ref[0] = logits * inv


def fused_forward(params, emb_bf16, mask_bias):
    B, S, H = emb_bf16.shape
    full2 = lambda shape: pl.BlockSpec(shape, lambda b: (0, 0))
    full3 = lambda shape: pl.BlockSpec(shape, lambda b: (0, 0, 0))
    return pl.pallas_call(
        _model_kernel,
        out_shape=jax.ShapeDtypeStruct((B, 1, PAD_CLASSES), jnp.float32),
        grid=(B,),
        in_specs=[
            pl.BlockSpec((1, S, H), lambda b: (b, 0, 0)),       # emb (bf16)
            pl.BlockSpec((1, 1, S), lambda b: (b, 0, 0)),       # additive mask bias
            full2((1, H)), full2((1, H)),                       # emb LN gamma/beta
            full3((LAYERS, H, 3 * H)), full3((LAYERS, 1, 3 * H)),       # w_qkv, b_qkv
            full3((LAYERS, H, H)), full3((LAYERS, 1, H)),               # w_o, b_o
            full3((LAYERS, 1, H)), full3((LAYERS, 1, H)),               # ln1 g/b
            full3((LAYERS, H, INTERMEDIATE)), full3((LAYERS, 1, INTERMEDIATE)),  # w_i, b_i
            full3((LAYERS, INTERMEDIATE, H)), full3((LAYERS, 1, H)),    # w_f, b_f
            full3((LAYERS, 1, H)), full3((LAYERS, 1, H)),               # ln2 g/b
            full2((H, H)), full2((1, H)),                               # pooler w/b
            full2((H, PAD_CLASSES)),                                    # classifier (padded)
        ],
        out_specs=pl.BlockSpec((1, 1, PAD_CLASSES), lambda b: (b, 0, 0)),
        compiler_params=pltpu.CompilerParams(
            dimension_semantics=("parallel",), vmem_limit_bytes=VMEM_LIMIT),
    )(emb_bf16, mask_bias,
      params["emb_ln_g"], params["emb_ln_b"],
      params["w_qkv"], params["b_qkv"], params["w_o"], params["b_o"],
      params["ln1_g"], params["ln1_b"],
      params["w_i"], params["b_i"], params["w_f"], params["b_f"],
      params["ln2_g"], params["ln2_b"],
      params["w_pool"], params["b_pool"], params["w_cls_pad"])


# ------------------------------ parameter setup --------------------------------
def init_params(key):
    """Deterministic, device-ready params: bf16 matmul weights, f32 bias/LN.
    Per-layer weights are stacked along a leading LAYERS axis (all resident in VMEM)."""
    def nrm(k, shape, scale=0.02):
        return scale * jax.random.normal(k, shape, dtype=jnp.float32)

    kit = iter(jax.random.split(key, 5 + 4 * LAYERS))
    word_emb = nrm(next(kit), (VOCAB, HIDDEN))
    pos_emb = nrm(next(kit), (MAX_POS, HIDDEN))
    type_emb = nrm(next(kit), (TYPE_VOCAB, HIDDEN))
    w_qkv = jnp.stack([nrm(next(kit), (HIDDEN, 3 * HIDDEN)) for _ in range(LAYERS)])
    w_o = jnp.stack([nrm(next(kit), (HIDDEN, HIDDEN)) for _ in range(LAYERS)])
    w_i = jnp.stack([nrm(next(kit), (HIDDEN, INTERMEDIATE)) for _ in range(LAYERS)])
    w_f = jnp.stack([nrm(next(kit), (INTERMEDIATE, HIDDEN)) for _ in range(LAYERS)])
    w_pool = nrm(next(kit), (HIDDEN, HIDDEN))
    w_cls = nrm(next(kit), (HIDDEN, NUM_CLASSES))        # nn.Linear(768, 10, bias=False)
    w_cls_pad = jnp.zeros((HIDDEN, PAD_CLASSES), jnp.float32).at[:, :NUM_CLASSES].set(w_cls)

    return {
        "word_emb": word_emb,
        "pos_emb": pos_emb,
        "type_emb": type_emb,
        "emb_ln_g": jnp.ones((1, HIDDEN), jnp.float32),
        "emb_ln_b": jnp.zeros((1, HIDDEN), jnp.float32),
        "w_qkv": w_qkv.astype(jnp.bfloat16),
        "b_qkv": jnp.zeros((LAYERS, 1, 3 * HIDDEN), jnp.float32),
        "w_o": w_o.astype(jnp.bfloat16),
        "b_o": jnp.zeros((LAYERS, 1, HIDDEN), jnp.float32),
        "ln1_g": jnp.ones((LAYERS, 1, HIDDEN), jnp.float32),
        "ln1_b": jnp.zeros((LAYERS, 1, HIDDEN), jnp.float32),
        "w_i": w_i.astype(jnp.bfloat16),
        "b_i": jnp.zeros((LAYERS, 1, INTERMEDIATE), jnp.float32),
        "w_f": w_f.astype(jnp.bfloat16),
        "b_f": jnp.zeros((LAYERS, 1, HIDDEN), jnp.float32),
        "ln2_g": jnp.ones((LAYERS, 1, HIDDEN), jnp.float32),
        "ln2_b": jnp.zeros((LAYERS, 1, HIDDEN), jnp.float32),
        "w_pool": w_pool.astype(jnp.bfloat16),
        "b_pool": jnp.zeros((1, HIDDEN), jnp.float32),
        "w_cls_pad": w_cls_pad.astype(jnp.bfloat16),
    }


# -------------------------------- forward pass ---------------------------------
def classify_model_forward(params, input_ids, attention_mask, token_type_ids):
    B, S = input_ids.shape
    # Embedding gathers are glue in plain JAX; the sum is fed to the kernel as
    # bf16 (halves the pre-LN HBM bytes).  Everything else runs in ONE kernel.
    emb = (params["word_emb"][input_ids]
           + params["pos_emb"][jnp.arange(S)][None, :, :]
           + params["type_emb"][token_type_ids]).astype(jnp.bfloat16)     # (B, S, H)
    mask_bias = ((1.0 - attention_mask.astype(jnp.float32)) * -1e9).reshape(B, 1, S)

    out = fused_forward(params, emb, mask_bias)          # (B, 1, PAD_CLASSES) f32
    return out[:, 0, :NUM_CLASSES]                       # (B, 10)


# ------------------------------------ main --------------------------------------
if __name__ == "__main__":
    key = jax.random.PRNGKey(0)
    pkey, ikey = jax.random.split(key)
    params = init_params(pkey)

    B, S = 2, 8
    input_ids = jax.random.randint(ikey, (B, S), 0, VOCAB, dtype=jnp.int32)
    attention_mask = jnp.array([[1, 1, 1, 1, 1, 1, 0, 0],
                                [1, 1, 1, 1, 1, 1, 1, 1]], dtype=jnp.int32)
    token_type_ids = jnp.array([[0, 0, 0, 0, 1, 1, 1, 1],
                                [0, 0, 0, 0, 0, 1, 1, 1]], dtype=jnp.int32)

    fwd = jax.jit(classify_model_forward)
    out = fwd(params, input_ids, attention_mask, token_type_ids)
    out = jax.block_until_ready(out)
    assert out.shape == (B, NUM_CLASSES)
    # rows should be unit-norm after F.normalize(p=2, dim=1)
    assert jnp.allclose(jnp.linalg.norm(out, axis=1), 1.0, atol=1e-3)
    print("KERNEL_OK")
</pallas_src>

<mosaic_0001>
module attributes {stable_mosaic.version = 11 : i64} {
  func.func @_model_kernel(%arg0: i32, %arg1: memref<1x8x128xbf16, #tpu.memory_space<vmem>>, %arg2: memref<1x1x8xf32, #tpu.memory_space<vmem>>, %arg3: memref<1x128xf32, #tpu.memory_space<vmem>>, %arg4: memref<1x128xf32, #tpu.memory_space<vmem>>, %arg5: memref<2x128x384xbf16, #tpu.memory_space<vmem>>, %arg6: memref<2x1x384xf32, #tpu.memory_space<vmem>>, %arg7: memref<2x128x128xbf16, #tpu.memory_space<vmem>>, %arg8: memref<2x1x128xf32, #tpu.memory_space<vmem>>, %arg9: memref<2x1x128xf32, #tpu.memory_space<vmem>>, %arg10: memref<2x1x128xf32, #tpu.memory_space<vmem>>, %arg11: memref<2x128x256xbf16, #tpu.memory_space<vmem>>, %arg12: memref<2x1x256xf32, #tpu.memory_space<vmem>>, %arg13: memref<2x256x128xbf16, #tpu.memory_space<vmem>>, %arg14: memref<2x1x128xf32, #tpu.memory_space<vmem>>, %arg15: memref<2x1x128xf32, #tpu.memory_space<vmem>>, %arg16: memref<2x1x128xf32, #tpu.memory_space<vmem>>, %arg17: memref<128x128xbf16, #tpu.memory_space<vmem>>, %arg18: memref<1x128xf32, #tpu.memory_space<vmem>>, %arg19: memref<128x128xbf16, #tpu.memory_space<vmem>>, %arg20: memref<1x1x128xf32, #tpu.memory_space<vmem>>) attributes {dimension_semantics = [#tpu.dimension_semantics<parallel>], iteration_bounds = array<i64: 2>, scalar_prefetch = 0 : i64, scratch_operands = 0 : i64, tpu.core_type = #tpu.core_type<tc>, window_params = [{transform_indices = @transform_0, window_bounds = array<i64: 1, 8, 128>}, {transform_indices = @transform_1, window_bounds = array<i64: 1, 1, 8>}, {pipeline_mode = #tpu.pipeline_mode<synchronous>, transform_indices = @transform_2, window_bounds = array<i64: 1, 128>}, {pipeline_mode = #tpu.pipeline_mode<synchronous>, transform_indices = @transform_3, window_bounds = array<i64: 1, 128>}, {pipeline_mode = #tpu.pipeline_mode<synchronous>, transform_indices = @transform_4, window_bounds = array<i64: 2, 128, 384>}, {pipeline_mode = #tpu.pipeline_mode<synchronous>, transform_indices = @transform_5, window_bounds = array<i64: 2, 1, 384>}, {pipeline_mode = #tpu.pipeline_mode<synchronous>, transform_indices = @transform_6, window_bounds = array<i64: 2, 128, 128>}, {pipeline_mode = #tpu.pipeline_mode<synchronous>, transform_indices = @transform_7, window_bounds = array<i64: 2, 1, 128>}, {pipeline_mode = #tpu.pipeline_mode<synchronous>, transform_indices = @transform_8, window_bounds = array<i64: 2, 1, 128>}, {pipeline_mode = #tpu.pipeline_mode<synchronous>, transform_indices = @transform_9, window_bounds = array<i64: 2, 1, 128>}, {pipeline_mode = #tpu.pipeline_mode<synchronous>, transform_indices = @transform_10, window_bounds = array<i64: 2, 128, 256>}, {pipeline_mode = #tpu.pipeline_mode<synchronous>, transform_indices = @transform_11, window_bounds = array<i64: 2, 1, 256>}, {pipeline_mode = #tpu.pipeline_mode<synchronous>, transform_indices = @transform_12, window_bounds = array<i64: 2, 256, 128>}, {pipeline_mode = #tpu.pipeline_mode<synchronous>, transform_indices = @transform_13, window_bounds = array<i64: 2, 1, 128>}, {pipeline_mode = #tpu.pipeline_mode<synchronous>, transform_indices = @transform_14, window_bounds = array<i64: 2, 1, 128>}, {pipeline_mode = #tpu.pipeline_mode<synchronous>, transform_indices = @transform_15, window_bounds = array<i64: 2, 1, 128>}, {pipeline_mode = #tpu.pipeline_mode<synchronous>, transform_indices = @transform_16, window_bounds = array<i64: 128, 128>}, {pipeline_mode = #tpu.pipeline_mode<synchronous>, transform_indices = @transform_17, window_bounds = array<i64: 1, 128>}, {pipeline_mode = #tpu.pipeline_mode<synchronous>, transform_indices = @transform_18, window_bounds = array<i64: 128, 128>}, {transform_indices = @transform_19, window_bounds = array<i64: 1, 1, 128>}]} {
    %c0 = arith.constant 0 : index
    %c0_0 = arith.constant 0 : index
    %c0_1 = arith.constant 0 : index
    %0 = vector.load %arg2[%c0, %c0_0, %c0_1] : memref<1x1x8xf32, #tpu.memory_space<vmem>>, vector<1x1x8xf32>
    %1 = vector.shape_cast %0 : vector<1x1x8xf32> to vector<1x8xf32>
    %c0_2 = arith.constant 0 : index
    %c0_3 = arith.constant 0 : index
    %c0_4 = arith.constant 0 : index
    %2 = vector.load %arg1[%c0_2, %c0_3, %c0_4] : memref<1x8x128xbf16, #tpu.memory_space<vmem>>, vector<1x8x128xbf16>
    %3 = vector.shape_cast %2 : vector<1x8x128xbf16> to vector<8x128xbf16>
    %4 = arith.extf %3 : vector<8x128xbf16> to vector<8x128xf32>
    %c0_5 = arith.constant 0 : index
    %c0_6 = arith.constant 0 : index
    %5 = vector.load %arg3[%c0_5, %c0_6] : memref<1x128xf32, #tpu.memory_space<vmem>>, vector<1x128xf32>
    %c0_7 = arith.constant 0 : index
    %c0_8 = arith.constant 0 : index
    %6 = vector.load %arg4[%c0_7, %c0_8] : memref<1x128xf32, #tpu.memory_space<vmem>>, vector<1x128xf32>
    %cst = arith.constant dense<0.000000e+00> : vector<8xf32>
    %7 = vector.multi_reduction <add>, %4, %cst [1] : vector<8x128xf32> to vector<8xf32>
    %8 = vector.shape_cast %7 : vector<8xf32> to vector<8x1xf32>
    %cst_9 = arith.constant 1.280000e+02 : f32
    %9 = vector.broadcast %cst_9 : f32 to vector<8x1xf32>
    %10 = arith.divf %8, %9 : vector<8x1xf32>
    %11 = vector.broadcast %10 : vector<8x1xf32> to vector<8x128xf32>
    %12 = arith.subf %4, %11 : vector<8x128xf32>
    %13 = arith.mulf %12, %12 : vector<8x128xf32>
    %cst_10 = arith.constant dense<0.000000e+00> : vector<8xf32>
    %14 = vector.multi_reduction <add>, %13, %cst_10 [1] : vector<8x128xf32> to vector<8xf32>
    %15 = vector.shape_cast %14 : vector<8xf32> to vector<8x1xf32>
    %cst_11 = arith.constant 1.280000e+02 : f32
    %16 = vector.broadcast %cst_11 : f32 to vector<8x1xf32>
    %17 = arith.divf %15, %16 : vector<8x1xf32>
    %18 = vector.broadcast %10 : vector<8x1xf32> to vector<8x128xf32>
    %19 = arith.subf %4, %18 : vector<8x128xf32>
    %cst_12 = arith.constant 9.99999996E-13 : f32
    %20 = vector.broadcast %cst_12 : f32 to vector<8x1xf32>
    %21 = arith.addf %17, %20 : vector<8x1xf32>
    %22 = math.rsqrt %21 : vector<8x1xf32>
    %23 = vector.broadcast %22 : vector<8x1xf32> to vector<8x128xf32>
    %24 = arith.mulf %19, %23 : vector<8x128xf32>
    %25 = vector.broadcast %5 : vector<1x128xf32> to vector<8x128xf32>
    %26 = arith.mulf %24, %25 : vector<8x128xf32>
    %27 = vector.broadcast %6 : vector<1x128xf32> to vector<8x128xf32>
    %28 = arith.addf %26, %27 : vector<8x128xf32>
    %29 = arith.truncf %28 : vector<8x128xf32> to vector<8x128xbf16>
    %30 = arith.extf %29 : vector<8x128xbf16> to vector<8x128xf32>
    %c0_13 = arith.constant 0 : index
    %c0_14 = arith.constant 0 : index
    %c0_15 = arith.constant 0 : index
    %31 = vector.load %arg5[%c0_13, %c0_14, %c0_15] : memref<2x128x384xbf16, #tpu.memory_space<vmem>>, vector<1x128x384xbf16>
    %32 = vector.shape_cast %31 : vector<1x128x384xbf16> to vector<128x384xbf16>
    %cst_16 = arith.constant dense<0.000000e+00> : vector<8x384xf32>
    %33 = tpu.matmul %29, %32, %cst_16 {dimension_numbers = #tpu.dot_dimension_numbers<[1], [0], [0], [1], [0, 0, 1, 1], [], []>} : vector<8x128xbf16>, vector<128x384xbf16>, vector<8x384xf32> -> vector<8x384xf32>
    %c0_17 = arith.constant 0 : index
    %c0_18 = arith.constant 0 : index
    %c0_19 = arith.constant 0 : index
    %34 = vector.load %arg6[%c0_17, %c0_18, %c0_19] : memref<2x1x384xf32, #tpu.memory_space<vmem>>, vector<1x1x384xf32>
    %35 = vector.shape_cast %34 : vector<1x1x384xf32> to vector<1x384xf32>
    %36 = vector.broadcast %35 : vector<1x384xf32> to vector<8x384xf32>
    %37 = arith.addf %33, %36 : vector<8x384xf32>
    %38 = vector.extract_strided_slice %37 {offsets = [0, 0], sizes = [8, 128], strides = [1, 1]} : vector<8x384xf32> to vector<8x128xf32>
    %cst_20 = arith.constant 1.250000e-01 : f32
    %39 = vector.broadcast %cst_20 : f32 to vector<8x128xf32>
    %40 = arith.mulf %38, %39 : vector<8x128xf32>
    %41 = arith.truncf %40 : vector<8x128xf32> to vector<8x128xbf16>
    %42 = vector.extract_strided_slice %37 {offsets = [0, 128], sizes = [8, 256], strides = [1, 1]} : vector<8x384xf32> to vector<8x256xf32>
    %43 = arith.truncf %42 : vector<8x256xf32> to vector<8x256xbf16>
    %44 = vector.extract_strided_slice %41 {offsets = [0, 0], sizes = [8, 64], strides = [1, 1]} : vector<8x128xbf16> to vector<8x64xbf16>
    %45 = vector.extract_strided_slice %43 {offsets = [0, 0], sizes = [8, 64], strides = [1, 1]} : vector<8x256xbf16> to vector<8x64xbf16>
    %46 = vector.extract_strided_slice %43 {offsets = [0, 128], sizes = [8, 64], strides = [1, 1]} : vector<8x256xbf16> to vector<8x64xbf16>
    %cst_21 = arith.constant dense<0.000000e+00> : vector<8x8xf32>
    %47 = tpu.matmul %44, %45, %cst_21 {dimension_numbers = #tpu.dot_dimension_numbers<[1], [1], [0], [0], [0, 0, 1, 0], [], []>} : vector<8x64xbf16>, vector<8x64xbf16>, vector<8x8xf32> -> vector<8x8xf32>
    %48 = vector.broadcast %1 : vector<1x8xf32> to vector<8x8xf32>
    %49 = arith.addf %47, %48 : vector<8x8xf32>
    %cst_22 = arith.constant dense<0xFF800000> : vector<8xf32>
    %50 = vector.multi_reduction <maximumf>, %49, %cst_22 [1] : vector<8x8xf32> to vector<8xf32>
    %51 = vector.shape_cast %50 : vector<8xf32> to vector<8x1xf32>
    %52 = vector.broadcast %51 : vector<8x1xf32> to vector<8x8xf32>
    %53 = arith.subf %49, %52 : vector<8x8xf32>
    %54 = math.exp %53 : vector<8x8xf32>
    %cst_23 = arith.constant dense<0.000000e+00> : vector<8xf32>
    %55 = vector.multi_reduction <add>, %54, %cst_23 [1] : vector<8x8xf32> to vector<8xf32>
    %56 = vector.shape_cast %55 : vector<8xf32> to vector<8x1xf32>
    %57 = arith.truncf %54 : vector<8x8xf32> to vector<8x8xbf16>
    %cst_24 = arith.constant dense<0.000000e+00> : vector<8x64xf32>
    %58 = tpu.matmul %57, %46, %cst_24 {dimension_numbers = #tpu.dot_dimension_numbers<[1], [0], [0], [1], [0, 0, 1, 1], [], []>} : vector<8x8xbf16>, vector<8x64xbf16>, vector<8x64xf32> -> vector<8x64xf32>
    %59 = tpu.reciprocal %56 {approx = true} : vector<8x1xf32> -> vector<8x1xf32>
    %60 = vector.broadcast %59 : vector<8x1xf32> to vector<8x64xf32>
    %61 = arith.mulf %58, %60 : vector<8x64xf32>
    %62 = arith.truncf %61 : vector<8x64xf32> to vector<8x64xbf16>
    %63 = vector.extract_strided_slice %41 {offsets = [0, 64], sizes = [8, 64], strides = [1, 1]} : vector<8x128xbf16> to vector<8x64xbf16>
    %64 = vector.extract_strided_slice %43 {offsets = [0, 64], sizes = [8, 64], strides = [1, 1]} : vector<8x256xbf16> to vector<8x64xbf16>
    %65 = vector.extract_strided_slice %43 {offsets = [0, 192], sizes = [8, 64], strides = [1, 1]} : vector<8x256xbf16> to vector<8x64xbf16>
    %cst_25 = arith.constant dense<0.000000e+00> : vector<8x8xf32>
    %66 = tpu.matmul %63, %64, %cst_25 {dimension_numbers = #tpu.dot_dimension_numbers<[1], [1], [0], [0], [0, 0, 1, 0], [], []>} : vector<8x64xbf16>, vector<8x64xbf16>, vector<8x8xf32> -> vector<8x8xf32>
    %67 = vector.broadcast %1 : vector<1x8xf32> to vector<8x8xf32>
    %68 = arith.addf %66, %67 : vector<8x8xf32>
    %cst_26 = arith.constant dense<0xFF800000> : vector<8xf32>
    %69 = vector.multi_reduction <maximumf>, %68, %cst_26 [1] : vector<8x8xf32> to vector<8xf32>
    %70 = vector.shape_cast %69 : vector<8xf32> to vector<8x1xf32>
    %71 = vector.broadcast %70 : vector<8x1xf32> to vector<8x8xf32>
    %72 = arith.subf %68, %71 : vector<8x8xf32>
    %73 = math.exp %72 : vector<8x8xf32>
    %cst_27 = arith.constant dense<0.000000e+00> : vector<8xf32>
    %74 = vector.multi_reduction <add>, %73, %cst_27 [1] : vector<8x8xf32> to vector<8xf32>
    %75 = vector.shape_cast %74 : vector<8xf32> to vector<8x1xf32>
    %76 = arith.truncf %73 : vector<8x8xf32> to vector<8x8xbf16>
    %cst_28 = arith.constant dense<0.000000e+00> : vector<8x64xf32>
    %77 = tpu.matmul %76, %65, %cst_28 {dimension_numbers = #tpu.dot_dimension_numbers<[1], [0], [0], [1], [0, 0, 1, 1], [], []>} : vector<8x8xbf16>, vector<8x64xbf16>, vector<8x64xf32> -> vector<8x64xf32>
    %78 = tpu.reciprocal %75 {approx = true} : vector<8x1xf32> -> vector<8x1xf32>
    %79 = vector.broadcast %78 : vector<8x1xf32> to vector<8x64xf32>
    %80 = arith.mulf %77, %79 : vector<8x64xf32>
    %81 = arith.truncf %80 : vector<8x64xf32> to vector<8x64xbf16>
    %82 = tpu.concatenate %62, %81 in 1 : vector<8x64xbf16>, vector<8x64xbf16> -> vector<8x128xbf16>
    %c0_29 = arith.constant 0 : index
    %c0_30 = arith.constant 0 : index
    %c0_31 = arith.constant 0 : index
    %83 = vector.load %arg7[%c0_29, %c0_30, %c0_31] : memref<2x128x128xbf16, #tpu.memory_space<vmem>>, vector<1x128x128xbf16>
    %84 = vector.shape_cast %83 : vector<1x128x128xbf16> to vector<128x128xbf16>
    %cst_32 = arith.constant dense<0.000000e+00> : vector<8x128xf32>
    %85 = tpu.matmul %82, %84, %cst_32 {dimension_numbers = #tpu.dot_dimension_numbers<[1], [0], [0], [1], [0, 0, 1, 1], [], []>} : vector<8x128xbf16>, vector<128x128xbf16>, vector<8x128xf32> -> vector<8x128xf32>
    %c0_33 = arith.constant 0 : index
    %c0_34 = arith.constant 0 : index
    %c0_35 = arith.constant 0 : index
    %86 = vector.load %arg8[%c0_33, %c0_34, %c0_35] : memref<2x1x128xf32, #tpu.memory_space<vmem>>, vector<1x1x128xf32>
    %87 = vector.shape_cast %86 : vector<1x1x128xf32> to vector<1x128xf32>
    %88 = vector.broadcast %87 : vector<1x128xf32> to vector<8x128xf32>
    %89 = arith.addf %85, %88 : vector<8x128xf32>
    %90 = arith.addf %30, %89 : vector<8x128xf32>
    %c0_36 = arith.constant 0 : index
    %c0_37 = arith.constant 0 : index
    %c0_38 = arith.constant 0 : index
    %91 = vector.load %arg9[%c0_36, %c0_37, %c0_38] : memref<2x1x128xf32, #tpu.memory_space<vmem>>, vector<1x1x128xf32>
    %92 = vector.shape_cast %91 : vector<1x1x128xf32> to vector<1x128xf32>
    %c0_39 = arith.constant 0 : index
    %c0_40 = arith.constant 0 : index
    %c0_41 = arith.constant 0 : index
    %93 = vector.load %arg10[%c0_39, %c0_40, %c0_41] : memref<2x1x128xf32, #tpu.memory_space<vmem>>, vector<1x1x128xf32>
    %94 = vector.shape_cast %93 : vector<1x1x128xf32> to vector<1x128xf32>
    %cst_42 = arith.constant dense<0.000000e+00> : vector<8xf32>
    %95 = vector.multi_reduction <add>, %90, %cst_42 [1] : vector<8x128xf32> to vector<8xf32>
    %96 = vector.shape_cast %95 : vector<8xf32> to vector<8x1xf32>
    %cst_43 = arith.constant 1.280000e+02 : f32
    %97 = vector.broadcast %cst_43 : f32 to vector<8x1xf32>
    %98 = arith.divf %96, %97 : vector<8x1xf32>
    %99 = vector.broadcast %98 : vector<8x1xf32> to vector<8x128xf32>
    %100 = arith.subf %90, %99 : vector<8x128xf32>
    %101 = arith.mulf %100, %100 : vector<8x128xf32>
    %cst_44 = arith.constant dense<0.000000e+00> : vector<8xf32>
    %102 = vector.multi_reduction <add>, %101, %cst_44 [1] : vector<8x128xf32> to vector<8xf32>
    %103 = vector.shape_cast %102 : vector<8xf32> to vector<8x1xf32>
    %cst_45 = arith.constant 1.280000e+02 : f32
    %104 = vector.broadcast %cst_45 : f32 to vector<8x1xf32>
    %105 = arith.divf %103, %104 : vector<8x1xf32>
    %106 = vector.broadcast %98 : vector<8x1xf32> to vector<8x128xf32>
    %107 = arith.subf %90, %106 : vector<8x128xf32>
    %cst_46 = arith.constant 9.99999996E-13 : f32
    %108 = vector.broadcast %cst_46 : f32 to vector<8x1xf32>
    %109 = arith.addf %105, %108 : vector<8x1xf32>
    %110 = math.rsqrt %109 : vector<8x1xf32>
    %111 = vector.broadcast %110 : vector<8x1xf32> to vector<8x128xf32>
    %112 = arith.mulf %107, %111 : vector<8x128xf32>
    %113 = vector.broadcast %92 : vector<1x128xf32> to vector<8x128xf32>
    %114 = arith.mulf %112, %113 : vector<8x128xf32>
    %115 = vector.broadcast %94 : vector<1x128xf32> to vector<8x128xf32>
    %116 = arith.addf %114, %115 : vector<8x128xf32>
    %117 = arith.truncf %116 : vector<8x128xf32> to vector<8x128xbf16>
    %118 = arith.extf %117 : vector<8x128xbf16> to vector<8x128xf32>
    %c0_47 = arith.constant 0 : index
    %c0_48 = arith.constant 0 : index
    %c0_49 = arith.constant 0 : index
    %119 = vector.load %arg11[%c0_47, %c0_48, %c0_49] : memref<2x128x256xbf16, #tpu.memory_space<vmem>>, vector<1x128x256xbf16>
    %120 = vector.shape_cast %119 : vector<1x128x256xbf16> to vector<128x256xbf16>
    %cst_50 = arith.constant dense<0.000000e+00> : vector<8x256xf32>
    %121 = tpu.matmul %117, %120, %cst_50 {dimension_numbers = #tpu.dot_dimension_numbers<[1], [0], [0], [1], [0, 0, 1, 1], [], []>} : vector<8x128xbf16>, vector<128x256xbf16>, vector<8x256xf32> -> vector<8x256xf32>
    %c0_51 = arith.constant 0 : index
    %c0_52 = arith.constant 0 : index
    %c0_53 = arith.constant 0 : index
    %122 = vector.load %arg12[%c0_51, %c0_52, %c0_53] : memref<2x1x256xf32, #tpu.memory_space<vmem>>, vector<1x1x256xf32>
    %123 = vector.shape_cast %122 : vector<1x1x256xf32> to vector<1x256xf32>
    %124 = vector.broadcast %123 : vector<1x256xf32> to vector<8x256xf32>
    %125 = arith.addf %121, %124 : vector<8x256xf32>
    %126 = arith.mulf %125, %125 : vector<8x256xf32>
    %127 = arith.mulf %125, %126 : vector<8x256xf32>
    %cst_54 = arith.constant 4.471500e-02 : f32
    %128 = vector.broadcast %cst_54 : f32 to vector<8x256xf32>
    %129 = arith.mulf %128, %127 : vector<8x256xf32>
    %130 = arith.addf %125, %129 : vector<8x256xf32>
    %cst_55 = arith.constant 0.797884583 : f32
    %131 = vector.broadcast %cst_55 : f32 to vector<8x256xf32>
    %132 = arith.mulf %131, %130 : vector<8x256xf32>
    %133 = math.tanh %132 : vector<8x256xf32>
    %cst_56 = arith.constant 1.000000e+00 : f32
    %134 = vector.broadcast %cst_56 : f32 to vector<8x256xf32>
    %135 = arith.addf %134, %133 : vector<8x256xf32>
    %cst_57 = arith.constant 5.000000e-01 : f32
    %136 = vector.broadcast %cst_57 : f32 to vector<8x256xf32>
    %137 = arith.mulf %136, %135 : vector<8x256xf32>
    %138 = arith.mulf %125, %137 : vector<8x256xf32>
    %139 = arith.truncf %138 : vector<8x256xf32> to vector<8x256xbf16>
    %c0_58 = arith.constant 0 : index
    %c0_59 = arith.constant 0 : index
    %c0_60 = arith.constant 0 : index
    %140 = vector.load %arg13[%c0_58, %c0_59, %c0_60] : memref<2x256x128xbf16, #tpu.memory_space<vmem>>, vector<1x256x128xbf16>
    %141 = vector.shape_cast %140 : vector<1x256x128xbf16> to vector<256x128xbf16>
    %cst_61 = arith.constant dense<0.000000e+00> : vector<8x128xf32>
    %142 = tpu.matmul %139, %141, %cst_61 {dimension_numbers = #tpu.dot_dimension_numbers<[1], [0], [0], [1], [0, 0, 1, 1], [], []>} : vector<8x256xbf16>, vector<256x128xbf16>, vector<8x128xf32> -> vector<8x128xf32>
    %c0_62 = arith.constant 0 : index
    %c0_63 = arith.constant 0 : index
    %c0_64 = arith.constant 0 : index
    %143 = vector.load %arg14[%c0_62, %c0_63, %c0_64] : memref<2x1x128xf32, #tpu.memory_space<vmem>>, vector<1x1x128xf32>
    %144 = vector.shape_cast %143 : vector<1x1x128xf32> to vector<1x128xf32>
    %145 = vector.broadcast %144 : vector<1x128xf32> to vector<8x128xf32>
    %146 = arith.addf %142, %145 : vector<8x128xf32>
    %147 = arith.addf %146, %118 : vector<8x128xf32>
    %c0_65 = arith.constant 0 : index
    %c0_66 = arith.constant 0 : index
    %c0_67 = arith.constant 0 : index
    %148 = vector.load %arg15[%c0_65, %c0_66, %c0_67] : memref<2x1x128xf32, #tpu.memory_space<vmem>>, vector<1x1x128xf32>
    %149 = vector.shape_cast %148 : vector<1x1x128xf32> to vector<1x128xf32>
    %c0_68 = arith.constant 0 : index
    %c0_69 = arith.constant 0 : index
    %c0_70 = arith.constant 0 : index
    %150 = vector.load %arg16[%c0_68, %c0_69, %c0_70] : memref<2x1x128xf32, #tpu.memory_space<vmem>>, vector<1x1x128xf32>
    %151 = vector.shape_cast %150 : vector<1x1x128xf32> to vector<1x128xf32>
    %cst_71 = arith.constant dense<0.000000e+00> : vector<8xf32>
    %152 = vector.multi_reduction <add>, %147, %cst_71 [1] : vector<8x128xf32> to vector<8xf32>
    %153 = vector.shape_cast %152 : vector<8xf32> to vector<8x1xf32>
    %cst_72 = arith.constant 1.280000e+02 : f32
    %154 = vector.broadcast %cst_72 : f32 to vector<8x1xf32>
    %155 = arith.divf %153, %154 : vector<8x1xf32>
    %156 = vector.broadcast %155 : vector<8x1xf32> to vector<8x128xf32>
    %157 = arith.subf %147, %156 : vector<8x128xf32>
    %158 = arith.mulf %157, %157 : vector<8x128xf32>
    %cst_73 = arith.constant dense<0.000000e+00> : vector<8xf32>
    %159 = vector.multi_reduction <add>, %158, %cst_73 [1] : vector<8x128xf32> to vector<8xf32>
    %160 = vector.shape_cast %159 : vector<8xf32> to vector<8x1xf32>
    %cst_74 = arith.constant 1.280000e+02 : f32
    %161 = vector.broadcast %cst_74 : f32 to vector<8x1xf32>
    %162 = arith.divf %160, %161 : vector<8x1xf32>
    %163 = vector.broadcast %155 : vector<8x1xf32> to vector<8x128xf32>
    %164 = arith.subf %147, %163 : vector<8x128xf32>
    %cst_75 = arith.constant 9.99999996E-13 : f32
    %165 = vector.broadcast %cst_75 : f32 to vector<8x1xf32>
    %166 = arith.addf %162, %165 : vector<8x1xf32>
    %167 = math.rsqrt %166 : vector<8x1xf32>
    %168 = vector.broadcast %167 : vector<8x1xf32> to vector<8x128xf32>
    %169 = arith.mulf %164, %168 : vector<8x128xf32>
    %170 = vector.broadcast %149 : vector<1x128xf32> to vector<8x128xf32>
    %171 = arith.mulf %169, %170 : vector<8x128xf32>
    %172 = vector.broadcast %151 : vector<1x128xf32> to vector<8x128xf32>
    %173 = arith.addf %171, %172 : vector<8x128xf32>
    %174 = arith.truncf %173 : vector<8x128xf32> to vector<8x128xbf16>
    %175 = arith.extf %174 : vector<8x128xbf16> to vector<8x128xf32>
    %c1 = arith.constant 1 : index
    %c0_76 = arith.constant 0 : index
    %c0_77 = arith.constant 0 : index
    %176 = vector.load %arg5[%c1, %c0_76, %c0_77] : memref<2x128x384xbf16, #tpu.memory_space<vmem>>, vector<1x128x384xbf16>
    %177 = vector.shape_cast %176 : vector<1x128x384xbf16> to vector<128x384xbf16>
    %cst_78 = arith.constant dense<0.000000e+00> : vector<8x384xf32>
    %178 = tpu.matmul %174, %177, %cst_78 {dimension_numbers = #tpu.dot_dimension_numbers<[1], [0], [0], [1], [0, 0, 1, 1], [], []>} : vector<8x128xbf16>, vector<128x384xbf16>, vector<8x384xf32> -> vector<8x384xf32>
    %c1_79 = arith.constant 1 : index
    %c0_80 = arith.constant 0 : index
    %c0_81 = arith.constant 0 : index
    %179 = vector.load %arg6[%c1_79, %c0_80, %c0_81] : memref<2x1x384xf32, #tpu.memory_space<vmem>>, vector<1x1x384xf32>
    %180 = vector.shape_cast %179 : vector<1x1x384xf32> to vector<1x384xf32>
    %181 = vector.broadcast %180 : vector<1x384xf32> to vector<8x384xf32>
    %182 = arith.addf %178, %181 : vector<8x384xf32>
    %183 = vector.extract_strided_slice %182 {offsets = [0, 0], sizes = [8, 128], strides = [1, 1]} : vector<8x384xf32> to vector<8x128xf32>
    %cst_82 = arith.constant 1.250000e-01 : f32
    %184 = vector.broadcast %cst_82 : f32 to vector<8x128xf32>
    %185 = arith.mulf %183, %184 : vector<8x128xf32>
    %186 = arith.truncf %185 : vector<8x128xf32> to vector<8x128xbf16>
    %187 = vector.extract_strided_slice %182 {offsets = [0, 128], sizes = [8, 256], strides = [1, 1]} : vector<8x384xf32> to vector<8x256xf32>
    %188 = arith.truncf %187 : vector<8x256xf32> to vector<8x256xbf16>
    %189 = vector.extract_strided_slice %186 {offsets = [0, 0], sizes = [8, 64], strides = [1, 1]} : vector<8x128xbf16> to vector<8x64xbf16>
    %190 = vector.extract_strided_slice %188 {offsets = [0, 0], sizes = [8, 64], strides = [1, 1]} : vector<8x256xbf16> to vector<8x64xbf16>
    %191 = vector.extract_strided_slice %188 {offsets = [0, 128], sizes = [8, 64], strides = [1, 1]} : vector<8x256xbf16> to vector<8x64xbf16>
    %cst_83 = arith.constant dense<0.000000e+00> : vector<8x8xf32>
    %192 = tpu.matmul %189, %190, %cst_83 {dimension_numbers = #tpu.dot_dimension_numbers<[1], [1], [0], [0], [0, 0, 1, 0], [], []>} : vector<8x64xbf16>, vector<8x64xbf16>, vector<8x8xf32> -> vector<8x8xf32>
    %193 = vector.broadcast %1 : vector<1x8xf32> to vector<8x8xf32>
    %194 = arith.addf %192, %193 : vector<8x8xf32>
    %cst_84 = arith.constant dense<0xFF800000> : vector<8xf32>
    %195 = vector.multi_reduction <maximumf>, %194, %cst_84 [1] : vector<8x8xf32> to vector<8xf32>
    %196 = vector.shape_cast %195 : vector<8xf32> to vector<8x1xf32>
    %197 = vector.broadcast %196 : vector<8x1xf32> to vector<8x8xf32>
    %198 = arith.subf %194, %197 : vector<8x8xf32>
    %199 = math.exp %198 : vector<8x8xf32>
    %cst_85 = arith.constant dense<0.000000e+00> : vector<8xf32>
    %200 = vector.multi_reduction <add>, %199, %cst_85 [1] : vector<8x8xf32> to vector<8xf32>
    %201 = vector.shape_cast %200 : vector<8xf32> to vector<8x1xf32>
    %202 = arith.truncf %199 : vector<8x8xf32> to vector<8x8xbf16>
    %cst_86 = arith.constant dense<0.000000e+00> : vector<8x64xf32>
    %203 = tpu.matmul %202, %191, %cst_86 {dimension_numbers = #tpu.dot_dimension_numbers<[1], [0], [0], [1], [0, 0, 1, 1], [], []>} : vector<8x8xbf16>, vector<8x64xbf16>, vector<8x64xf32> -> vector<8x64xf32>
    %204 = tpu.reciprocal %201 {approx = true} : vector<8x1xf32> -> vector<8x1xf32>
    %205 = vector.broadcast %204 : vector<8x1xf32> to vector<8x64xf32>
    %206 = arith.mulf %203, %205 : vector<8x64xf32>
    %207 = arith.truncf %206 : vector<8x64xf32> to vector<8x64xbf16>
    %208 = vector.extract_strided_slice %186 {offsets = [0, 64], sizes = [8, 64], strides = [1, 1]} : vector<8x128xbf16> to vector<8x64xbf16>
    %209 = vector.extract_strided_slice %188 {offsets = [0, 64], sizes = [8, 64], strides = [1, 1]} : vector<8x256xbf16> to vector<8x64xbf16>
    %210 = vector.extract_strided_slice %188 {offsets = [0, 192], sizes = [8, 64], strides = [1, 1]} : vector<8x256xbf16> to vector<8x64xbf16>
    %cst_87 = arith.constant dense<0.000000e+00> : vector<8x8xf32>
    %211 = tpu.matmul %208, %209, %cst_87 {dimension_numbers = #tpu.dot_dimension_numbers<[1], [1], [0], [0], [0, 0, 1, 0], [], []>} : vector<8x64xbf16>, vector<8x64xbf16>, vector<8x8xf32> -> vector<8x8xf32>
    %212 = vector.broadcast %1 : vector<1x8xf32> to vector<8x8xf32>
    %213 = arith.addf %211, %212 : vector<8x8xf32>
    %cst_88 = arith.constant dense<0xFF800000> : vector<8xf32>
    %214 = vector.multi_reduction <maximumf>, %213, %cst_88 [1] : vector<8x8xf32> to vector<8xf32>
    %215 = vector.shape_cast %214 : vector<8xf32> to vector<8x1xf32>
    %216 = vector.broadcast %215 : vector<8x1xf32> to vector<8x8xf32>
    %217 = arith.subf %213, %216 : vector<8x8xf32>
    %218 = math.exp %217 : vector<8x8xf32>
    %cst_89 = arith.constant dense<0.000000e+00> : vector<8xf32>
    %219 = vector.multi_reduction <add>, %218, %cst_89 [1] : vector<8x8xf32> to vector<8xf32>
    %220 = vector.shape_cast %219 : vector<8xf32> to vector<8x1xf32>
    %221 = arith.truncf %218 : vector<8x8xf32> to vector<8x8xbf16>
    %cst_90 = arith.constant dense<0.000000e+00> : vector<8x64xf32>
    %222 = tpu.matmul %221, %210, %cst_90 {dimension_numbers = #tpu.dot_dimension_numbers<[1], [0], [0], [1], [0, 0, 1, 1], [], []>} : vector<8x8xbf16>, vector<8x64xbf16>, vector<8x64xf32> -> vector<8x64xf32>
    %223 = tpu.reciprocal %220 {approx = true} : vector<8x1xf32> -> vector<8x1xf32>
    %224 = vector.broadcast %223 : vector<8x1xf32> to vector<8x64xf32>
    %225 = arith.mulf %222, %224 : vector<8x64xf32>
    %226 = arith.truncf %225 : vector<8x64xf32> to vector<8x64xbf16>
    %227 = tpu.concatenate %207, %226 in 1 : vector<8x64xbf16>, vector<8x64xbf16> -> vector<8x128xbf16>
    %c1_91 = arith.constant 1 : index
    %c0_92 = arith.constant 0 : index
    %c0_93 = arith.constant 0 : index
    %228 = vector.load %arg7[%c1_91, %c0_92, %c0_93] : memref<2x128x128xbf16, #tpu.memory_space<vmem>>, vector<1x128x128xbf16>
    %229 = vector.shape_cast %228 : vector<1x128x128xbf16> to vector<128x128xbf16>
    %cst_94 = arith.constant dense<0.000000e+00> : vector<8x128xf32>
    %230 = tpu.matmul %227, %229, %cst_94 {dimension_numbers = #tpu.dot_dimension_numbers<[1], [0], [0], [1], [0, 0, 1, 1], [], []>} : vector<8x128xbf16>, vector<128x128xbf16>, vector<8x128xf32> -> vector<8x128xf32>
    %c1_95 = arith.constant 1 : index
    %c0_96 = arith.constant 0 : index
    %c0_97 = arith.constant 0 : index
    %231 = vector.load %arg8[%c1_95, %c0_96, %c0_97] : memref<2x1x128xf32, #tpu.memory_space<vmem>>, vector<1x1x128xf32>
    %232 = vector.shape_cast %231 : vector<1x1x128xf32> to vector<1x128xf32>
    %233 = vector.broadcast %232 : vector<1x128xf32> to vector<8x128xf32>
    %234 = arith.addf %230, %233 : vector<8x128xf32>
    %235 = arith.addf %175, %234 : vector<8x128xf32>
    %c1_98 = arith.constant 1 : index
    %c0_99 = arith.constant 0 : index
    %c0_100 = arith.constant 0 : index
    %236 = vector.load %arg9[%c1_98, %c0_99, %c0_100] : memref<2x1x128xf32, #tpu.memory_space<vmem>>, vector<1x1x128xf32>
    %237 = vector.shape_cast %236 : vector<1x1x128xf32> to vector<1x128xf32>
    %c1_101 = arith.constant 1 : index
    %c0_102 = arith.constant 0 : index
    %c0_103 = arith.constant 0 : index
    %238 = vector.load %arg10[%c1_101, %c0_102, %c0_103] : memref<2x1x128xf32, #tpu.memory_space<vmem>>, vector<1x1x128xf32>
    %239 = vector.shape_cast %238 : vector<1x1x128xf32> to vector<1x128xf32>
    %cst_104 = arith.constant dense<0.000000e+00> : vector<8xf32>
    %240 = vector.multi_reduction <add>, %235, %cst_104 [1] : vector<8x128xf32> to vector<8xf32>
    %241 = vector.shape_cast %240 : vector<8xf32> to vector<8x1xf32>
    %cst_105 = arith.constant 1.280000e+02 : f32
    %242 = vector.broadcast %cst_105 : f32 to vector<8x1xf32>
    %243 = arith.divf %241, %242 : vector<8x1xf32>
    %244 = vector.broadcast %243 : vector<8x1xf32> to vector<8x128xf32>
    %245 = arith.subf %235, %244 : vector<8x128xf32>
    %246 = arith.mulf %245, %245 : vector<8x128xf32>
    %cst_106 = arith.constant dense<0.000000e+00> : vector<8xf32>
    %247 = vector.multi_reduction <add>, %246, %cst_106 [1] : vector<8x128xf32> to vector<8xf32>
    %248 = vector.shape_cast %247 : vector<8xf32> to vector<8x1xf32>
    %cst_107 = arith.constant 1.280000e+02 : f32
    %249 = vector.broadcast %cst_107 : f32 to vector<8x1xf32>
    %250 = arith.divf %248, %249 : vector<8x1xf32>
    %251 = vector.broadcast %243 : vector<8x1xf32> to vector<8x128xf32>
    %252 = arith.subf %235, %251 : vector<8x128xf32>
    %cst_108 = arith.constant 9.99999996E-13 : f32
    %253 = vector.broadcast %cst_108 : f32 to vector<8x1xf32>
    %254 = arith.addf %250, %253 : vector<8x1xf32>
    %255 = math.rsqrt %254 : vector<8x1xf32>
    %256 = vector.broadcast %255 : vector<8x1xf32> to vector<8x128xf32>
    %257 = arith.mulf %252, %256 : vector<8x128xf32>
    %258 = vector.broadcast %237 : vector<1x128xf32> to vector<8x128xf32>
    %259 = arith.mulf %257, %258 : vector<8x128xf32>
    %260 = vector.broadcast %239 : vector<1x128xf32> to vector<8x128xf32>
    %261 = arith.addf %259, %260 : vector<8x128xf32>
    %262 = arith.truncf %261 : vector<8x128xf32> to vector<8x128xbf16>
    %263 = arith.extf %262 : vector<8x128xbf16> to vector<8x128xf32>
    %c1_109 = arith.constant 1 : index
    %c0_110 = arith.constant 0 : index
    %c0_111 = arith.constant 0 : index
    %264 = vector.load %arg11[%c1_109, %c0_110, %c0_111] : memref<2x128x256xbf16, #tpu.memory_space<vmem>>, vector<1x128x256xbf16>
    %265 = vector.shape_cast %264 : vector<1x128x256xbf16> to vector<128x256xbf16>
    %cst_112 = arith.constant dense<0.000000e+00> : vector<8x256xf32>
    %266 = tpu.matmul %262, %265, %cst_112 {dimension_numbers = #tpu.dot_dimension_numbers<[1], [0], [0], [1], [0, 0, 1, 1], [], []>} : vector<8x128xbf16>, vector<128x256xbf16>, vector<8x256xf32> -> vector<8x256xf32>
    %c1_113 = arith.constant 1 : index
    %c0_114 = arith.constant 0 : index
    %c0_115 = arith.constant 0 : index
    %267 = vector.load %arg12[%c1_113, %c0_114, %c0_115] : memref<2x1x256xf32, #tpu.memory_space<vmem>>, vector<1x1x256xf32>
    %268 = vector.shape_cast %267 : vector<1x1x256xf32> to vector<1x256xf32>
    %269 = vector.broadcast %268 : vector<1x256xf32> to vector<8x256xf32>
    %270 = arith.addf %266, %269 : vector<8x256xf32>
    %271 = arith.mulf %270, %270 : vector<8x256xf32>
    %272 = arith.mulf %270, %271 : vector<8x256xf32>
    %cst_116 = arith.constant 4.471500e-02 : f32
    %273 = vector.broadcast %cst_116 : f32 to vector<8x256xf32>
    %274 = arith.mulf %273, %272 : vector<8x256xf32>
    %275 = arith.addf %270, %274 : vector<8x256xf32>
    %cst_117 = arith.constant 0.797884583 : f32
    %276 = vector.broadcast %cst_117 : f32 to vector<8x256xf32>
    %277 = arith.mulf %276, %275 : vector<8x256xf32>
    %278 = math.tanh %277 : vector<8x256xf32>
    %cst_118 = arith.constant 1.000000e+00 : f32
    %279 = vector.broadcast %cst_118 : f32 to vector<8x256xf32>
    %280 = arith.addf %279, %278 : vector<8x256xf32>
    %cst_119 = arith.constant 5.000000e-01 : f32
    %281 = vector.broadcast %cst_119 : f32 to vector<8x256xf32>
    %282 = arith.mulf %281, %280 : vector<8x256xf32>
    %283 = arith.mulf %270, %282 : vector<8x256xf32>
    %284 = arith.truncf %283 : vector<8x256xf32> to vector<8x256xbf16>
    %c1_120 = arith.constant 1 : index
    %c0_121 = arith.constant 0 : index
    %c0_122 = arith.constant 0 : index
    %285 = vector.load %arg13[%c1_120, %c0_121, %c0_122] : memref<2x256x128xbf16, #tpu.memory_space<vmem>>, vector<1x256x128xbf16>
    %286 = vector.shape_cast %285 : vector<1x256x128xbf16> to vector<256x128xbf16>
    %cst_123 = arith.constant dense<0.000000e+00> : vector<8x128xf32>
    %287 = tpu.matmul %284, %286, %cst_123 {dimension_numbers = #tpu.dot_dimension_numbers<[1], [0], [0], [1], [0, 0, 1, 1], [], []>} : vector<8x256xbf16>, vector<256x128xbf16>, vector<8x128xf32> -> vector<8x128xf32>
    %c1_124 = arith.constant 1 : index
    %c0_125 = arith.constant 0 : index
    %c0_126 = arith.constant 0 : index
    %288 = vector.load %arg14[%c1_124, %c0_125, %c0_126] : memref<2x1x128xf32, #tpu.memory_space<vmem>>, vector<1x1x128xf32>
    %289 = vector.shape_cast %288 : vector<1x1x128xf32> to vector<1x128xf32>
    %290 = vector.broadcast %289 : vector<1x128xf32> to vector<8x128xf32>
    %291 = arith.addf %287, %290 : vector<8x128xf32>
    %292 = arith.addf %291, %263 : vector<8x128xf32>
    %c1_127 = arith.constant 1 : index
    %c0_128 = arith.constant 0 : index
    %c0_129 = arith.constant 0 : index
    %293 = vector.load %arg15[%c1_127, %c0_128, %c0_129] : memref<2x1x128xf32, #tpu.memory_space<vmem>>, vector<1x1x128xf32>
    %294 = vector.shape_cast %293 : vector<1x1x128xf32> to vector<1x128xf32>
    %c1_130 = arith.constant 1 : index
    %c0_131 = arith.constant 0 : index
    %c0_132 = arith.constant 0 : index
    %295 = vector.load %arg16[%c1_130, %c0_131, %c0_132] : memref<2x1x128xf32, #tpu.memory_space<vmem>>, vector<1x1x128xf32>
    %296 = vector.shape_cast %295 : vector<1x1x128xf32> to vector<1x128xf32>
    %cst_133 = arith.constant dense<0.000000e+00> : vector<8xf32>
    %297 = vector.multi_reduction <add>, %292, %cst_133 [1] : vector<8x128xf32> to vector<8xf32>
    %298 = vector.shape_cast %297 : vector<8xf32> to vector<8x1xf32>
    %cst_134 = arith.constant 1.280000e+02 : f32
    %299 = vector.broadcast %cst_134 : f32 to vector<8x1xf32>
    %300 = arith.divf %298, %299 : vector<8x1xf32>
    %301 = vector.broadcast %300 : vector<8x1xf32> to vector<8x128xf32>
    %302 = arith.subf %292, %301 : vector<8x128xf32>
    %303 = arith.mulf %302, %302 : vector<8x128xf32>
    %cst_135 = arith.constant dense<0.000000e+00> : vector<8xf32>
    %304 = vector.multi_reduction <add>, %303, %cst_135 [1] : vector<8x128xf32> to vector<8xf32>
    %305 = vector.shape_cast %304 : vector<8xf32> to vector<8x1xf32>
    %cst_136 = arith.constant 1.280000e+02 : f32
    %306 = vector.broadcast %cst_136 : f32 to vector<8x1xf32>
    %307 = arith.divf %305, %306 : vector<8x1xf32>
    %308 = vector.broadcast %300 : vector<8x1xf32> to vector<8x128xf32>
    %309 = arith.subf %292, %308 : vector<8x128xf32>
    %cst_137 = arith.constant 9.99999996E-13 : f32
    %310 = vector.broadcast %cst_137 : f32 to vector<8x1xf32>
    %311 = arith.addf %307, %310 : vector<8x1xf32>
    %312 = math.rsqrt %311 : vector<8x1xf32>
    %313 = vector.broadcast %312 : vector<8x1xf32> to vector<8x128xf32>
    %314 = arith.mulf %309, %313 : vector<8x128xf32>
    %315 = vector.broadcast %294 : vector<1x128xf32> to vector<8x128xf32>
    %316 = arith.mulf %314, %315 : vector<8x128xf32>
    %317 = vector.broadcast %296 : vector<1x128xf32> to vector<8x128xf32>
    %318 = arith.addf %316, %317 : vector<8x128xf32>
    %319 = arith.truncf %318 : vector<8x128xf32> to vector<8x128xbf16>
    %320 = vector.extract_strided_slice %319 {offsets = [0, 0], sizes = [1, 128], strides = [1, 1]} : vector<8x128xbf16> to vector<1x128xbf16>
    %c0_138 = arith.constant 0 : index
    %c0_139 = arith.constant 0 : index
    %321 = vector.load %arg17[%c0_138, %c0_139] : memref<128x128xbf16, #tpu.memory_space<vmem>>, vector<128x128xbf16>
    %cst_140 = arith.constant dense<0.000000e+00> : vector<1x128xf32>
    %322 = tpu.matmul %320, %321, %cst_140 {dimension_numbers = #tpu.dot_dimension_numbers<[1], [0], [0], [1], [0, 0, 1, 1], [], []>} : vector<1x128xbf16>, vector<128x128xbf16>, vector<1x128xf32> -> vector<1x128xf32>
    %c0_141 = arith.constant 0 : index
    %c0_142 = arith.constant 0 : index
    %323 = vector.load %arg18[%c0_141, %c0_142] : memref<1x128xf32, #tpu.memory_space<vmem>>, vector<1x128xf32>
    %324 = arith.addf %322, %323 : vector<1x128xf32>
    %325 = math.tanh %324 : vector<1x128xf32>
    %326 = arith.truncf %325 : vector<1x128xf32> to vector<1x128xbf16>
    %c0_143 = arith.constant 0 : index
    %c0_144 = arith.constant 0 : index
    %327 = vector.load %arg19[%c0_143, %c0_144] : memref<128x128xbf16, #tpu.memory_space<vmem>>, vector<128x128xbf16>
    %cst_145 = arith.constant dense<0.000000e+00> : vector<1x128xf32>
    %328 = tpu.matmul %326, %327, %cst_145 {dimension_numbers = #tpu.dot_dimension_numbers<[1], [0], [0], [1], [0, 0, 1, 1], [], []>} : vector<1x128xbf16>, vector<128x128xbf16>, vector<1x128xf32> -> vector<1x128xf32>
    %329 = arith.mulf %328, %328 : vector<1x128xf32>
    %cst_146 = arith.constant dense<0.000000e+00> : vector<1xf32>
    %330 = vector.multi_reduction <add>, %329, %cst_146 [1] : vector<1x128xf32> to vector<1xf32>
    %331 = vector.shape_cast %330 : vector<1xf32> to vector<1x1xf32>
    %cst_147 = arith.constant 1.000000e-24 : f32
    %332 = vector.broadcast %cst_147 : f32 to vector<1x1xf32>
    %333 = arith.maximumf %331, %332 : vector<1x1xf32>
    %334 = math.rsqrt %333 : vector<1x1xf32>
    %335 = vector.broadcast %334 : vector<1x1xf32> to vector<1x128xf32>
    %336 = arith.mulf %328, %335 : vector<1x128xf32>
    %c0_148 = arith.constant 0 : index
    %c0_149 = arith.constant 0 : index
    %c0_150 = arith.constant 0 : index
    %337 = vector.load %arg20[%c0_148, %c0_149, %c0_150] : memref<1x1x128xf32, #tpu.memory_space<vmem>>, vector<1x1x128xf32>
    %338 = vector.shape_cast %337 : vector<1x1x128xf32> to vector<1x128xf32>
    %339 = vector.shape_cast %336 : vector<1x128xf32> to vector<1x1x128xf32>
    tpu.vector_store %arg20[%c0_148, %c0_149, %c0_150], %339 {strides = array<i32>} : memref<1x1x128xf32, #tpu.memory_space<vmem>>, vector<1x1x128xf32>,
    return
  }
  func.func @transform_0(%arg0: i32) -> (i32, i32, i32) {
    %c0_i32 = arith.constant 0 : i32
    %c0_i32_0 = arith.constant 0 : i32
    %c0_i32_1 = arith.constant 0 : i32
    return %arg0, %c0_i32, %c0_i32_0 : i32, i32, i32
  }
  func.func @transform_1(%arg0: i32) -> (i32, i32, i32) {
    %c0_i32 = arith.constant 0 : i32
    %c0_i32_0 = arith.constant 0 : i32
    %c0_i32_1 = arith.constant 0 : i32
    return %arg0, %c0_i32, %c0_i32_0 : i32, i32, i32
  }
  func.func @transform_2(%arg0: i32) -> (i32, i32) {
    %c0_i32 = arith.constant 0 : i32
    %c0_i32_0 = arith.constant 0 : i32
    %c0_i32_1 = arith.constant 0 : i32
    return %c0_i32, %c0_i32_0 : i32, i32
  }
  func.func @transform_3(%arg0: i32) -> (i32, i32) {
    %c0_i32 = arith.constant 0 : i32
    %c0_i32_0 = arith.constant 0 : i32
    %c0_i32_1 = arith.constant 0 : i32
    return %c0_i32, %c0_i32_0 : i32, i32
  }
  func.func @transform_4(%arg0: i32) -> (i32, i32, i32) {
    %c0_i32 = arith.constant 0 : i32
    %c0_i32_0 = arith.constant 0 : i32
    %c0_i32_1 = arith.constant 0 : i32
    %c0_i32_2 = arith.constant 0 : i32
    return %c0_i32, %c0_i32_0, %c0_i32_1 : i32, i32, i32
  }
  func.func @transform_5(%arg0: i32) -> (i32, i32, i32) {
    %c0_i32 = arith.constant 0 : i32
    %c0_i32_0 = arith.constant 0 : i32
    %c0_i32_1 = arith.constant 0 : i32
    %c0_i32_2 = arith.constant 0 : i32
    return %c0_i32, %c0_i32_0, %c0_i32_1 : i32, i32, i32
  }
  func.func @transform_6(%arg0: i32) -> (i32, i32, i32) {
    %c0_i32 = arith.constant 0 : i32
    %c0_i32_0 = arith.constant 0 : i32
    %c0_i32_1 = arith.constant 0 : i32
    %c0_i32_2 = arith.constant 0 : i32
    return %c0_i32, %c0_i32_0, %c0_i32_1 : i32, i32, i32
  }
  func.func @transform_7(%arg0: i32) -> (i32, i32, i32) {
    %c0_i32 = arith.constant 0 : i32
    %c0_i32_0 = arith.constant 0 : i32
    %c0_i32_1 = arith.constant 0 : i32
    %c0_i32_2 = arith.constant 0 : i32
    return %c0_i32, %c0_i32_0, %c0_i32_1 : i32, i32, i32
  }
  func.func @transform_8(%arg0: i32) -> (i32, i32, i32) {
    %c0_i32 = arith.constant 0 : i32
    %c0_i32_0 = arith.constant 0 : i32
    %c0_i32_1 = arith.constant 0 : i32
    %c0_i32_2 = arith.constant 0 : i32
    return %c0_i32, %c0_i32_0, %c0_i32_1 : i32, i32, i32
  }
  func.func @transform_9(%arg0: i32) -> (i32, i32, i32) {
    %c0_i32 = arith.constant 0 : i32
    %c0_i32_0 = arith.constant 0 : i32
    %c0_i32_1 = arith.constant 0 : i32
    %c0_i32_2 = arith.constant 0 : i32
    return %c0_i32, %c0_i32_0, %c0_i32_1 : i32, i32, i32
  }
  func.func @transform_10(%arg0: i32) -> (i32, i32, i32) {
    %c0_i32 = arith.constant 0 : i32
    %c0_i32_0 = arith.constant 0 : i32
    %c0_i32_1 = arith.constant 0 : i32
    %c0_i32_2 = arith.constant 0 : i32
    return %c0_i32, %c0_i32_0, %c0_i32_1 : i32, i32, i32
  }
  func.func @transform_11(%arg0: i32) -> (i32, i32, i32) {
    %c0_i32 = arith.constant 0 : i32
    %c0_i32_0 = arith.constant 0 : i32
    %c0_i32_1 = arith.constant 0 : i32
    %c0_i32_2 = arith.constant 0 : i32
    return %c0_i32, %c0_i32_0, %c0_i32_1 : i32, i32, i32
  }
  func.func @transform_12(%arg0: i32) -> (i32, i32, i32) {
    %c0_i32 = arith.constant 0 : i32
    %c0_i32_0 = arith.constant 0 : i32
    %c0_i32_1 = arith.constant 0 : i32
    %c0_i32_2 = arith.constant 0 : i32
    return %c0_i32, %c0_i32_0, %c0_i32_1 : i32, i32, i32
  }
  func.func @transform_13(%arg0: i32) -> (i32, i32, i32) {
    %c0_i32 = arith.constant 0 : i32
    %c0_i32_0 = arith.constant 0 : i32
    %c0_i32_1 = arith.constant 0 : i32
    %c0_i32_2 = arith.constant 0 : i32
    return %c0_i32, %c0_i32_0, %c0_i32_1 : i32, i32, i32
  }
  func.func @transform_14(%arg0: i32) -> (i32, i32, i32) {
    %c0_i32 = arith.constant 0 : i32
    %c0_i32_0 = arith.constant 0 : i32
    %c0_i32_1 = arith.constant 0 : i32
    %c0_i32_2 = arith.constant 0 : i32
    return %c0_i32, %c0_i32_0, %c0_i32_1 : i32, i32, i32
  }
  func.func @transform_15(%arg0: i32) -> (i32, i32, i32) {
    %c0_i32 = arith.constant 0 : i32
    %c0_i32_0 = arith.constant 0 : i32
    %c0_i32_1 = arith.constant 0 : i32
    %c0_i32_2 = arith.constant 0 : i32
    return %c0_i32, %c0_i32_0, %c0_i32_1 : i32, i32, i32
  }
  func.func @transform_16(%arg0: i32) -> (i32, i32) {
    %c0_i32 = arith.constant 0 : i32
    %c0_i32_0 = arith.constant 0 : i32
    %c0_i32_1 = arith.constant 0 : i32
    return %c0_i32, %c0_i32_0 : i32, i32
  }
  func.func @transform_17(%arg0: i32) -> (i32, i32) {
    %c0_i32 = arith.constant 0 : i32
    %c0_i32_0 = arith.constant 0 : i32
    %c0_i32_1 = arith.constant 0 : i32
    return %c0_i32, %c0_i32_0 : i32, i32
  }
  func.func @transform_18(%arg0: i32) -> (i32, i32) {
    %c0_i32 = arith.constant 0 : i32
    %c0_i32_0 = arith.constant 0 : i32
    %c0_i32_1 = arith.constant 0 : i32
    return %c0_i32, %c0_i32_0 : i32, i32
  }
  func.func @transform_19(%arg0: i32) -> (i32, i32, i32) {
    %c0_i32 = arith.constant 0 : i32
    %c0_i32_0 = arith.constant 0 : i32
    %c0_i32_1 = arith.constant 0 : i32
    return %arg0, %c0_i32, %c0_i32_0 : i32, i32, i32
  }
}

</mosaic_0001>

<bundles_post_ra>
// kernel: classify_model_forward.1
= control target key start
LH: loop header
LB: loop body
LE: loop exit
PB: predicated region body
PF: predicated region fallthrough
CT: control target
= control target key end

     0   :  { %s4701_s0 = inlined_call_operand.vmem [shape: bf16[2,8,128], index: 0, kind: input, shape index: {}]   ;;  %s4702_s1 = inlined_call_operand.vmem [shape: f32[2,1,8], index: 1, kind: input, shape index: {}]   ;;  %s4703_s2 = inlined_call_operand.vmem [shape: f32[1,128], index: 2, kind: input, shape index: {}]   ;;  %s4704_s3 = inlined_call_operand.vmem [shape: f32[1,128], index: 3, kind: input, shape index: {}]   ;;  %s4705_s4 = inlined_call_operand.hbm [shape: bf16[2,128,384], index: 4, kind: input, shape index: {}]   ;;  %s4706_s5 = inlined_call_operand.vmem [shape: f32[2,1,384], index: 5, kind: input, shape index: {}]   ;;  %s4707_s6 = inlined_call_operand.vmem [shape: bf16[2,128,128], index: 6, kind: input, shape index: {}]   ;;  %s4708_s7 = inlined_call_operand.vmem [shape: f32[2,1,128], index: 7, kind: input, shape index: {}]   ;;  %s4709_s8 = inlined_call_operand.vmem [shape: f32[2,1,128], index: 8, kind: input, shape index: {}]   ;;  %s4710_s9 = inlined_call_operand.vmem [shape: f32[2,1,128], index: 9, kind: input, shape index: {}]   ;;  %s4711_s10 = inlined_call_operand.vmem [shape: bf16[2,128,256], index: 10, kind: input, shape index: {}]   ;;  %s4712_s11 = inlined_call_operand.vmem [shape: f32[2,1,256], index: 11, kind: input, shape index: {}]   ;;  %s4713_s12 = inlined_call_operand.hbm [shape: bf16[2,256,128], index: 12, kind: input, shape index: {}]   ;;  %s4714_s13 = inlined_call_operand.vmem [shape: f32[2,1,128], index: 13, kind: input, shape index: {}]   ;;  %s4715_s14 = inlined_call_operand.vmem [shape: f32[2,1,128], index: 14, kind: input, shape index: {}]   ;;  %s4716_s15 = inlined_call_operand.vmem [shape: f32[2,1,128], index: 15, kind: input, shape index: {}]   ;;  %s4717_s16 = inlined_call_operand.hbm [shape: bf16[128,128], index: 16, kind: input, shape index: {}]   ;;  %s4718_s17 = inlined_call_operand.vmem [shape: f32[1,128], index: 17, kind: input, shape index: {}]   ;;  %s4719_s18 = inlined_call_operand.vmem [shape: bf16[128,128], index: 18, kind: input, shape index: {}]   ;;  %s4720_s19 = inlined_call_operand.hbm [shape: f32[2,1,128], index: 19, kind: output, shape index: {}]  }
   0x1   :  { %4736 = sst [smem:[#allocation20_spill]] %s4701_s0 }
   0x2   :  { %4737 = sst [smem:[#allocation21_spill]] %s4702_s1 }
   0x3   :  { %4738 = sst [smem:[#allocation22_spill]] %s4703_s2 }
   0x4   :  { %4739 = sst [smem:[#allocation23_spill]] %s4704_s3 }
   0x5   :  { %4740 = sst [smem:[#allocation24_spill]] %s4713_s12 }
   0x6   :  { %4741 = sst [smem:[#allocation25_spill]] %s4718_s17 }
   0x7   :  { %4742 = sst [smem:[#allocation26_spill]] %s4720_s19 }
   0x8   :  { %24 = vsyncpa [#allocation3], 0 }
   0x9   :  { %25 = vsyncpa [#allocation6], 0 }
   0xa   :  { %26 = vsyncpa [#allocation4], 0 }
   0xb   :  { %28 = vsyncpa [#allocation4 + $0x1], 0  ;;  %s4106_s0 = smov 0   ;;  %s4108_s30 = smov 0  }
   0xc   :  { %s4110_s20 = smov 0   ;;  %s4112_s21 = smov 0  }
   0xd LB: > { %4743 = sst [smem:[#allocation12_spill]] %s3980_s0  ;;  %s4127_s1 = sadd.s32 4294967295, %s3992_s21   ;;  %s3992_s21 = sphi %s4112_s21, %s4778_s21   ;;  %s3988_s20 = sphi %s4110_s20, %s4781_s20   ;;  %s3984_s30 = sphi %s4108_s30, %s4780_s30   ;;  %s3980_s0 = sphi %s4106_s0, %s4779_s0  }
   0xe   : > { %4744 = sst [smem:[#allocation13_spill]] %s3984_s30  ;;  %s3043_s22 = sadd.s32 4294967294, %s3992_s21  }
   0xf   : > { %4745 = sst [smem:[#allocation14_spill]] %s3988_s20  ;;  %s4131_s2 = sadd.s32 1, %s3992_s21  }
  0x10   : > { %4746 = sst [smem:[#allocation15_spill]] %s3992_s21  ;;  %s450_s23 = sadd.s32 1, %s3988_s20 }
  0x11   : > { %4747 = sst [smem:[#allocation16_spill]] %s4131_s2  ;;  %s447_s24 = ssub.s32 %s3992_s21, %s4131_s2 }
  0x12   : > { %p460_p0 = scmp.ne.s32.totalorder %s3988_s20, %s3984_s30  ;;  %p448_p1 = scmp.eq.s32.totalorder %s447_s24, 0 }
  0x13   : > { %p461_p2 = scmp.eq.s32.totalorder %s4127_s1, 1  ;;  %p466_p3 = scmp.ne.s32.totalorder %s3984_s30, %s3980_s0 }
  0x14   : > { %p467_p4 = scmp.eq.s32.totalorder %s3043_s22, 1  ;;  %p3044_p7 = scmp.ge.s32.totalorder %s3992_s21, 1 }
  0x15   : > { %s4142_s25 = scalar_select %p448_p1, %s3988_s20, %s450_s23  }
  0x16   : > { %p4144_p5 = por %p461_p2, %p460_p0  ;;  %p4148_p6 = por %p467_p4, %p466_p3 }
  0x17   : > { %4748 = sst [smem:[#allocation17_spill]] %s4142_s25  ;;  %p474_p8 = scmp.lt.s32.totalorder %s3992_s21, 3 }
  0x18   : > { %s4749_s3 = scalar_select %p4144_p5, 1, 0 }
  0x19   : > { %s4751_s26 = scalar_select %p4148_p6, 1, 0 }
  0x1a   : > { %4750 = sst [smem:[#allocation18_spill]] %s4749_s3  ;;  %p4727_p9 = scmp.eq.s32.totalorder %s4127_s1, 0 }
  0x1b   : > { %4752 = sst [smem:[#allocation19_spill]] %s4751_s26  ;;  %p4155_p10 = pnand %p3044_p7, %p474_p8 }
  0x1c   : > { %s3994_s28 = smov [#allocation5]   ;;  %s3995_s23 = smov [#allocation2]  }
  0x1d   : > { %s4753_s27 = scalar_select %p4155_p10, 1, 0 }
  0x1e   : > { %s526_s29 = sshll.u32 %s3994_s28, 4  ;;  %p3560_p11 = pneg %p4155_p10  ;;  %s527_s29 = int_to_ptr.vmem [resolvable:$true] %s526_s29 }
  0x1f   : > { %s492_s24 = sshll.u32 %s3995_s23, 4  ;;  %s4755_s12 = sld [smem:[#allocation24_spill]]  ;;  %s4167_s24 = int_to_ptr.vmem [resolvable:$true] %s492_s24 }
  0x20   : > { %p4163_p12 = pnand %p4727_p9, %p3560_p11 }
  0x22   : > { %p4177_p0 = pneg %p4163_p12 }
  0x25   : > { %s3838_s2 = scalar_lea.hbm %s4755_s12, 4096 }
  0x26   : > { %p3839_p13 = scmp.ne.s32.totalorder %s4755_s12, %s3838_s2  ;;  %p3845_p3 = scmp.lt.u32.totalorder %s3838_s2, %s4755_s12 }
  0x28   : > { %p3841_p1 = pnand %p4177_p0, %p3839_p13 }
  0x2a   : > { %p3842_p2 = pneg %p3841_p1 }
  0x2c   : > { %p3847_p4 = pnand %p3845_p3, %p3842_p2 }
  0x2e   : > { %3850 = shalt.err (!%p3847_p4)
}
  0x2f   : > { %s3851_s20 = scalar_lea.vmem %s527_s29, 4096  ;;  %p3859_p9 = scmp.lt.s32.totalorder %s527_s29, %s527_s29 }
  0x30   : > { %p3852_p7 = scmp.ne.s32.totalorder %s527_s29, %s3851_s20  ;;  %p3860_p6 = scmp.lt.s32.totalorder %s3851_s20, %s3851_s20 }
  0x32   : > { %p3854_p8 = pnand %p3852_p7, %p4177_p0  ;;  %p3861_p5 = por %p3860_p6, %p3859_p9 }
  0x34   : > { %p3855_p11 = pneg %p3854_p8 }
  0x36   : > { %p3862_p10 = pnand %p3861_p5, %p3855_p11 }
  0x38   : > { %3865 = shalt.err (!%p3862_p10)
}
  0x39   : > { %s4734_s0 = smov 64   ;;  %s4735_s25 = smov 4  }
  0x3a   : > { %3566 = dma.hbm_to_vmem [thread:$0]  (!%p4163_p12), %s4755_s12, 4096, %s527_s29, [#allocation6], %s4734_s0, %s4734_s0, %s4735_s25  }
  0x3b   : > { %s3866_s19 = scalar_lea.hbm %s4705_s4, 6144 }
  0x3c   : > { %p3867_p5 = scmp.ne.s32.totalorder %s4705_s4, %s3866_s19  ;;  %p3873_p10 = scmp.lt.u32.totalorder %s3866_s19, %s4705_s4 }
  0x3e   : > { %p3869_p6 = pnand %p3867_p5, %p4177_p0 }
  0x40   : > { %p3870_p9 = pneg %p3869_p6 }
  0x42   : > { %p3875_p13 = pnand %p3873_p10, %p3870_p9 }
  0x44   : > { %3878 = shalt.err (!%p3875_p13)
}
  0x45   : > { %s3879_s29 = scalar_lea.vmem %s4167_s24, 6144  ;;  %p3887_p4 = scmp.lt.s32.totalorder %s4167_s24, %s4167_s24 }
  0x46   : > { %p3880_p1 = scmp.ne.s32.totalorder %s4167_s24, %s3879_s29  ;;  %p3888_p7 = scmp.lt.s32.totalorder %s3879_s29, %s3879_s29 }
  0x48   : > { %p3882_p2 = pnand %p3880_p1, %p4177_p0  ;;  %p3889_p8 = por %p3888_p7, %p3887_p4 }
  0x4a   : > { %p3883_p3 = pneg %p3882_p2 }
  0x4c   : > { %p3890_p11 = pnand %p3889_p8, %p3883_p3 }
  0x4e   : > { %3893 = shalt.err (!%p3890_p11)
}
  0x4f   : > { %s3998_s3 = smov 192   ;;  %s3999_s17 = smov 12  }
  0x50   : > { %3563 = dma.hbm_to_vmem [thread:$0]  (!%p4163_p12), %s4705_s4, 6144, %s4167_s24, [#allocation3], %s3998_s3, %s3998_s3, %s3999_s17  }
  0x51   : > { %s4000_s21 = smov [#allocation7]   ;;  %s3894_s20 = scalar_lea.hbm %s4717_s16, 1024 }
  0x52   : > { %s548_s2 = sshll.u32 %s4000_s21, 4  ;;  %p3895_p5 = scmp.ne.s32.totalorder %s4717_s16, %s3894_s20  ;;  %s549_s2 = int_to_ptr.vmem [resolvable:$true] %s548_s2 }
  0x53   : > { %p3901_p10 = scmp.lt.u32.totalorder %s3894_s20, %s4717_s16 }
  0x54   : > { %p3897_p6 = pnand %p3895_p5, %p4177_p0 }
  0x56   : > { %p3898_p9 = pneg %p3897_p6 }
  0x58   : > { %p3903_p13 = pnand %p3901_p10, %p3898_p9 }
  0x5a   : > { %3906 = shalt.err (!%p3903_p13)
}
  0x5b   : > { %s3907_s24 = scalar_lea.vmem %s549_s2, 1024  ;;  %p3915_p4 = scmp.lt.s32.totalorder %s549_s2, %s549_s2 }
  0x5c   : > { %p3908_p1 = scmp.ne.s32.totalorder %s549_s2, %s3907_s24  ;;  %p3916_p7 = scmp.lt.s32.totalorder %s3907_s24, %s3907_s24 }
  0x5e   : > { %p3910_p2 = pnand %p3908_p1, %p4177_p0  ;;  %p3917_p8 = por %p3916_p7, %p3915_p4 }
  0x60   : > { %p3911_p3 = pneg %p3910_p2 }
  0x62   : > { %p3918_p11 = pnand %p3917_p8, %p3911_p3 }
  0x64   : > { %3921 = shalt.err (!%p3918_p11)
}
  0x65   : > { %s4757_s0 = smov 4   ;;  %s4758_s3 = smov 64  }
  0x66   : > { %3569 = dma.hbm_to_vmem [thread:$0]  (!%p4163_p12), %s4717_s16, 1024, %s549_s2, [#allocation6], %s4758_s3, %s4758_s3, %s4757_s0  }
  0x67   : > { %p4759_p5 = scmp.ne.s32.totalorder %s4753_s27, 0 }
  0x68   : > { %p4760_p0 = scmp.eq.s32.totalorder (!%p4759_p5), %s4127_s1, 0 }
  0x69   : > { %583 = sbr.rel (%p4759_p5) target bundleno = 6290 (0x1892), region = 96 }
  0x70   : > { %3967 = dma.done.wait (%p4760_p0), [#allocation3], 6144   ;;  %p4761_p6 = pmov %p4760_p0 }
  0x71   : > { %p4762_p9 = pmov %p4760_p0 }
  0x72   : > { %3969 = vsyncadd (%p4761_p6), [#allocation3], 4294961152 }
  0x73   : > { %3971 = dma.done.wait (%p4762_p9), [#allocation6], 5120   ;;  %p4763_p10 = pmov %p4760_p0 }
  0x74   : > { %p648_p13 = scmp.lt.s32.totalorder %s4127_s1, 1  ;;  %s4764_s19 = sld [smem:[#allocation20_spill]]  ;;  %v3624_v2 = vld [vmem:[#allocation2 + $0x4] ss:$12 sps:$4 sm:$0xff]   ;;  %v3626_v3 = vld [vmem:[#allocation2] ss:$12 sps:$4 sm:$0xff]   ;;  %v723_v42 = vlaneseq }
  0x75   : > { %3973 = vsyncadd (%p4763_p10), [#allocation6], 4294962176  ;;  %v4001_v4 = vmov 0.0   ;;  %v3627_v5 = vld [vmem:[#allocation2 + $0x8] ss:$12 sps:$4 sm:$0xff]   ;;  %866 = vmatprep.subr.bf16.mxu0 %v3624_v2  ;;  %v4002_v26 = vmov 0  }
  0x76   : > { %s4252_s22 = scalar_select %p648_p13, %s4127_s1, 1  ;;  %3378 = vmatprep.subr.bf16.mxu1 %v4001_v4  ;;  %v3628_v6 = vld [vmem:[#allocation2 + $0x1c] ss:$12 sps:$4 sm:$0xff]   ;;  %v3630_v7 = vld [vmem:[#allocation2 + $0x18] ss:$12 sps:$4 sm:$0xff]   ;;  %867 = vmatpush1.bf16.msra.mxu0 %v3626_v3  ;;  %vm4003_vm0 = vmmov 0  }
  0x77   : > { %v3631_v8 = vld [vmem:[#allocation2 + $0x20] ss:$12 sps:$4 sm:$0xff]   ;;  %3379 = vmatpush3.bf16.msra.mxu1 %v3627_v5  ;;  %868 = vmatprep.subr.bf16.mxu0 %v3628_v6  ;;  %v3634_v14 = vld [vmem:[#allocation2 + $0x30] ss:$12 sps:$4 sm:$0xff]   ;;  %v3635_v15 = vld [vmem:[#allocation2 + $0x38] ss:$12 sps:$4 sm:$0xff]  }
  0x78   : > { %s3053_s27 = sshll.u32 %s4252_s22, 2  ;;  %v3632_v9 = vld [vmem:[#allocation2 + $0x34] ss:$12 sps:$4 sm:$0xff]   ;;  %3380 = vmatprep.subr.bf16.mxu1 %v4001_v4  ;;  %v3636_v16 = vld [vmem:[#allocation2 + $0x4c] ss:$12 sps:$4 sm:$0xff]   ;;  %898 = vmatprep.mubr.bf16.mxu0 %v4002_v26  ;;  %s4765_s26 = sld [smem:[#allocation22_spill]] }
  0x79   : > { %v3638_v17 = vld [vmem:[#allocation2 + $0x48] ss:$12 sps:$4 sm:$0xff]   ;;  %v3639_v18 = vld [vmem:[#allocation2 + $0x50] ss:$12 sps:$4 sm:$0xff]   ;;  %v3642_v20 = vld [vmem:[#allocation2 + $0x60] ss:$12 sps:$4 sm:$0xff]   ;;  %3394 = vmatprep.mubr.msk.bf16.mxu1 %vm4003_vm0, %v4001_v4 }
  0x7a   : > { %s651_s30 = scalar_lea.vmem %s4764_s19, %s3053_s27  ;;  %869 = vmatpush1.bf16.msra.mxu0 %v3630_v7  ;;  %v3640_v19 = vld [vmem:[#allocation2 + $0x64] ss:$12 sps:$4 sm:$0xff]   ;;  %v3643_v21 = vld [vmem:[#allocation2 + $0x68] ss:$12 sps:$4 sm:$0xff]   ;;  %v3647_v24 = vld [vmem:[#allocation2 + $0x80] ss:$12 sps:$4 sm:$0xff]  }
  0x7b   : > { %v657_v0 = vld [vmem:[%s651_s30] sm:$0xf]  ;;  %3381 = vmatpush3.bf16.msra.mxu1 %v3631_v8  ;;  %870 = vmatprep.subr.bf16.mxu0 %v3632_v9  ;;  %v3644_v22 = vld [vmem:[#allocation2 + $0x7c] ss:$12 sps:$4 sm:$0xff]   ;;  %v3646_v23 = vld [vmem:[#allocation2 + $0x78] ss:$12 sps:$4 sm:$0xff]  }
  0x7c   : > { %v658_v1 = vunpack.c.l.bf16 %v657_v0  ;;  %3382 = vmatprep.subr.bf16.mxu1 %v4001_v4  ;;  %v3648_v25 = vld [vmem:[#allocation2 + $0x94] ss:$12 sps:$4 sm:$0xff]   ;;  %v3650_v27 = vld [vmem:[#allocation2 + $0x90] ss:$12 sps:$4 sm:$0xff]   ;;  %v3651_v28 = vld [vmem:[#allocation2 + $0x98] ss:$12 sps:$4 sm:$0xff]  }
  0x7d   : > { %v3652_v29 = vld [vmem:[#allocation2 + $0xac] ss:$12 sps:$4 sm:$0xff]   ;;  %v3654_v30 = vld [vmem:[#allocation2 + $0xa8] ss:$12 sps:$4 sm:$0xff]   ;;  %v3655_v31 = vld [vmem:[#allocation2 + $0xb0] ss:$12 sps:$4 sm:$0xff]  }
  0x7e   : > { %661 = vadd.xlane.f32.xlu0 %v658_v1  ;;  %871 = vmatpush1.bf16.msra.mxu0 %v3634_v14  ;;  %v3054_v36 = vld [vmem:[%s4765_s26] ss:$0 sm:$0xff]  ;;  %s4766_s29 = sld [smem:[#allocation23_spill]]  ;;  %v4285_v43 = vshrl.u32 %v723_v42, 7  ;;  %vm957_vm1 = vcmask 523264   ;;  %s4004_s3 = smov 64  }
  0x7f   : > { %3383 = vmatpush3.bf16.msra.mxu1 %v3635_v15  ;;  %872 = vmatprep.subr.bf16.mxu0 %v3636_v16  ;;  %v721_v45 = vld [vmem:[%s4706_s5] sm:$0x7]  ;;  %vm1018_vm2 = vcmask 1043456   ;;  %s4767_s27 = sld [smem:[#allocation21_spill]]  ;;  %vm1004_vm3 = vcmask 64512   ;;  %v3657_v42 = vld [vmem:[%s4707_s6 + $0x8] sm:$0xff]  }
  0x80   : > { %3384 = vmatprep.subr.bf16.mxu1 %v4001_v4  ;;  %v4288_v44 = vsub.s32 0, %v4285_v43  ;;  %v4294_v46 = vsub.s32 1, %v4285_v43  ;;  %v733_v48 = vsub.s32 2, %v4285_v43  ;;  %s4768_s12 = sld [smem:[#allocation25_spill]]  ;;  %s4769_s25 = sld [smem:[#allocation13_spill]]  ;;  %vm2927_vm4 = vcmask 1040384  }
  0x81   : > { %s4771_s21 = sld [smem:[#allocation26_spill]] }
  0x82   : > { %873 = vmatpush1.bf16.msra.mxu0 %v3638_v17  ;;  %v726_v47 = vrot.slane %v721_v45, %v4288_v44  ;;  %v730_v49 = vrot.slane %v721_v45, %v4294_v46  ;;  %v734_v53 = vrot.slane %v721_v45, %v733_v48  ;;  %v3658_v45 = vld [vmem:[%s4707_s6 + $0x10] sm:$0xff]  }
  0x83   : > { %3385 = vmatpush3.bf16.msra.mxu1 %v3639_v18  ;;  %874 = vmatprep.subr.bf16.mxu0 %v3640_v19 }
  0x84   : > { %3386 = vmatprep.subr.bf16.mxu1 %v4001_v4  ;;  %v3055_v38 = vld [vmem:[%s4766_s29] ss:$0 sm:$0xff] }
  0x85   : > { %s654_s28 = scalar_lea.vmem %s4767_s27, %s4252_s22  ;;  %s4770_s27 = sld [smem:[#allocation18_spill]] }
  0x86   : > { %875 = vmatpush1.bf16.msra.mxu0 %v3642_v20  ;;  %v4314_v5 = vld [vmem:[%s654_s28] ss:$0 sm:$0xff]  ;;  %s646_s28 = sand.u32 1, %s4769_s25   ;;  %s3261_s22 = sshll.u32 %s4127_s1, 4 }
  0x87   : > { %3387 = vmatpush3.bf16.msra.mxu1 %v3643_v21  ;;  %876 = vmatprep.subr.bf16.mxu0 %v3644_v22  ;;  %s647_s17 = scalar_lea.vmem [#allocation8], %s646_s28  ;;  %s4772_s2 = smov %s4771_s21 }
  0x88   : > { %3388 = vmatprep.subr.bf16.mxu1 %v4001_v4  ;;  %s4659_s26 = scalar_lea.hbm %s4771_s21, %s3261_s22  ;;  %s2936_s23 = scalar_lea.sflag [#allocation4], %s646_s28 }
  0x89   : > { %s4005_s1 = smov [#allocation8]  }
  0x8a   : > { %877 = vmatpush1.bf16.msra.mxu0 %v3646_v23  ;;  %s3926_s29 = sshll.u32 %s4005_s1, 4  ;;  %s3927_s29 = int_to_ptr.vmem [resolvable:$false] %s3926_s29 }
  0x8b   : > { %3389 = vmatpush3.bf16.msra.mxu1 %v3647_v24  ;;  %878 = vmatprep.subr.bf16.mxu0 %v3648_v25  ;;  %p4773_p1 = scmp.ne.s32.totalorder %s4770_s27, 0  ;;  %s3928_s24 = scalar_lea.vmem %s3927_s29, 32 }
  0x8c   : > { %3390 = vmatprep.subr.bf16.mxu1 %v4001_v4 }
  0x8e   : > { %879 = vmatpush1.bf16.msra.mxu0 %v3650_v27 }
  0x8f   : > { %3391 = vmatpush3.bf16.msra.mxu1 %v3651_v28  ;;  %880 = vmatprep.subr.bf16.mxu0 %v3652_v29 }
  0x90   : > { %3392 = vmatprep.subr.bf16.mxu1 %v4001_v4 }
  0x92   : > { %881 = vmatpush1.bf16.msra.mxu0 %v3654_v30 }
  0x93   : > { %3393 = vmatpush3.bf16.msra.mxu1 %v3655_v31  ;;  %3422 = vmatprep.subr.bf16.mxu0 %v4001_v4 }
  0x94   : > { %3398 = vmatprep.subr.bf16.mxu1 %v4001_v4 }
 0x10b   : > { %v662_v10 = vpop.xlane.xlu0 %661 }
 0x10c   : > { %v664_v11 = vmul.f32 0.0078125, %v662_v10 }
 0x10e   : > { %v665_v12 = vsub.f32 %v658_v1, %v664_v11 }
 0x110   : > { %v666_v13 = vmul.f32 %v665_v12, %v665_v12 }
 0x112   : > { %667 = vadd.xlane.f32.xlu0 %v666_v13 }
 0x19f   : > { %v668_v32 = vpop.xlane.xlu0 %667 }
 0x1a0   : > { %v669_v33 = vmul.f32 0.0078125, %v668_v32 }
 0x1a2   : > { %v670_v34 = vadd.f32 1e-12, %v669_v33 }
 0x1a4   : > { %3800 = vrsqrt.f32 %v670_v34 }
 0x1ae   : > { %v3801_v35 = vpop.eup %3800 }
 0x1af   : > { %v672_v37 = vmul.f32 %v3801_v35, %v665_v12 }
 0x1b1   : > { %v679_v39 = vmul.f32 %v3054_v36, %v672_v37 }
 0x1b3   : > { %v686_v40 = vadd.f32 %v3055_v38, %v679_v39 }
 0x1b5   : > { %v4277_v41 = vpack.c.bf16 %v686_v40, %v686_v40  ;;  %v3656_v40 = vld [vmem:[%s4707_s6] sm:$0xff]  }
 0x1b7   : > { %899 = vmatmul.mubr.bf16.vlgmr.msra.gmra.mrb[0].mxu0 %v4277_v41  ;;  %3395 = vmatmul.mubr.bf16.vlgmr.msra.gmra.mrb[0].mxu1 %v4277_v41 }
 0x1b8   : > { %3400 = vmatprep.mubr.msk.bf16.mxu1 %vm4003_vm0, %v4001_v4  ;;  %3438 = vmatprep.mubr.msk.bf16.mxu0 %vm4003_vm0, %v4001_v4 }
 0x1b9   : > { %3423 = vmatpush3.bf16.msra.mxu0 %v3656_v40 }
 0x1ba   : > { %3424 = vmatprep.subr.bf16.mxu0 %v4001_v4 }
 0x1bd   : > { %3425 = vmatpush3.bf16.msra.mxu0 %v3657_v42 }
 0x1be   : > { %3426 = vmatprep.subr.bf16.mxu0 %v4001_v4 }
 0x1c1   : > { %3427 = vmatpush3.bf16.msra.mxu0 %v3658_v45 }
 0x1c2   : > { %3428 = vmatprep.subr.bf16.mxu0 %v4001_v4 }
 0x28a   : > { %v900_v50 = vpop.f32.mrb[0].mxu0  ;;  %v941_v51 = vpop.f32.mrb[0].mxu1 }
 0x28b   : > { %v901_v52 = vadd.f32 %v900_v50, %v726_v47  ;;  %v902_v54 = vpop.f32.mrb[1].mxu0  ;;  %v3396_v55 = vpop.f32.mrb[1].mxu1  ;;  %v942_v0 = vadd.f32 %v941_v51, %v734_v53  ;;  %v3659_v47 = vld [vmem:[%s4707_s6 + $0x18] sm:$0xff]   ;;  %v3661_v50 = vld [vmem:[%s4707_s6 + $0x28] sm:$0xff]   ;;  %v3662_v51 = vld [vmem:[%s4707_s6 + $0x30] sm:$0xff]  }
 0x28c   : > { %v903_v56 = vadd.f32 %v902_v54, %v730_v49  ;;  %v904_v57 = vpop.f32.mrb[2].mxu0  ;;  %v944_v58 = vpop.f32.mrb[2].mxu1  ;;  %3429 = vmatpush3.bf16.msra.mxu0 %v3659_v47  ;;  %v3660_v49 = vld [vmem:[%s4707_s6 + $0x20] sm:$0xff]  }
 0x28d   : > { %v947_v59 = vmul.f32 0.125, %v901_v52  ;;  %v905_v60 = vpop.f32.mrb[3].mxu0  ;;  %v3397_v61 = vpop.f32.mrb[3].mxu1  ;;  %v950_v2 = vpack.c.bf16 %v942_v0, %v942_v0  ;;  %3430 = vmatprep.subr.bf16.mxu0 %v4001_v4  ;;  %v3663_v52 = vld [vmem:[%s4707_s6 + $0x38] sm:$0xff]   ;;  %v3688_v47 = vld [vmem:[#allocation5 + $0x40] sm:$0xff]  }
 0x28e   : > { %v949_v62 = vpack.c.bf16 %v903_v56, %v903_v56 }
 0x28f   : > { %v948_v63 = vpack.c.bf16 %v947_v59, %v947_v59  ;;  %v1020_v3 = vsel %vm1018_vm2, %v950_v2, 0 }
 0x290   : > { %v962_v1 = vsel %vm957_vm1, %v949_v62, 0  ;;  %3431 = vmatpush3.bf16.msra.mxu0 %v3660_v49  ;;  %v3689_v49 = vld [vmem:[#allocation5] sm:$0xff]  }
 0x291   : > { %3399 = vmatpush3.bf16.xpose.msra.mxu1 %v962_v1  ;;  %1066 = vrot.lane.b32.xlu0 %v948_v63, %s4004_s3 }
 0x292   : > { %3404 = vmatprep.subr.bf16.mxu1 %v4001_v4  ;;  %3432 = vmatprep.subr.bf16.mxu0 %v4001_v4 }
 0x294   : > { %3433 = vmatpush3.bf16.msra.mxu0 %v3661_v50  ;;  %v3690_v50 = vld [vmem:[#allocation5 + $0x48] sm:$0xff]  }
 0x295   : > { %1128 = vrot.lane.b32.xlu0 %v950_v2, %s4004_s3  ;;  %3434 = vmatprep.subr.bf16.mxu0 %v4001_v4 }
 0x298   : > { %3401 = vmatmul.mubr.msk.bf16.vlgmr.msra.gmra.mrb[4].mxu1 %vm957_vm1, %v948_v63  ;;  %3435 = vmatpush3.bf16.msra.mxu0 %v3662_v51  ;;  %v3691_v51 = vld [vmem:[#allocation5 + $0x8] sm:$0xff]  }
 0x299   : > { %3405 = vmatpush3.bf16.msra.mxu1 %v1020_v3  ;;  %3406 = vmatprep.mubr.msk.bf16.mxu1 %vm4003_vm0, %v4001_v4  ;;  %v3085_v3 = vld [vmem:[%s4708_s7] ss:$0 sm:$0xff] }
 0x29a   : > { %3410 = vmatprep.subr.bf16.mxu1 %v4001_v4  ;;  %3436 = vmatprep.subr.bf16.mxu0 %v4001_v4 }
 0x29c   : > { %3437 = vmatpush3.bf16.msra.mxu0 %v3663_v52  ;;  %v3692_v52 = vld [vmem:[#allocation5 + $0x50] sm:$0xff]  }
 0x29d   : > { %3290 = vmatprep.subr.bf16.mxu0 %v3688_v47  ;;  %v3707_v47 = vld [vmem:[#allocation2 + $0xc8] ss:$12 sps:$4 sm:$0xff]  }
 0x303   : > { %v1067_v18 = vpop.permute.xlu0 %1066 }
 0x307   : > { %v1129_v20 = vpop.permute.xlu0 %1128 }
 0x308   : > { %v1134_v21 = vsel %vm1018_vm2, %v1129_v20, 0 }
 0x36b   : > { %v998_v6 = vpop.f32.mrb[4].mxu1 }
 0x36c   : > { %v999_v7 = vadd.f32 %v4314_v5, %v998_v6  ;;  %v3402_v8 = vpop.f32.mrb[5].mxu1 }
 0x36d   : > { %v1001_v9 = vpop.f32.mrb[6].mxu1 }
 0x36e   : > { %v3403_v10 = vpop.f32.mrb[7].mxu1  ;;  %v1005_v11 = vsel %vm1004_vm3, %v999_v7, -inf  ;;  %v688_v9 = vunpack.c.l.bf16 %v4277_v41  ;;  %v3667_v41 = vld [vmem:[%s4711_s10 + $0x10] ss:$8 sps:$4 sm:$0xff]  }
 0x36f   : > { %1006 = vmax.xlane.f32.xlu1 %v1005_v11 }
 0x380   : > { %1069 = vrot.lane.b32.xlu1 %v949_v62, %s4004_s3 }
 0x3fc   : > { %v1007_v12 = vpop.xlane.xlu1 %1006 }
 0x3fd   : > { %v1008_v13 = vsub.f32 %v999_v7, %v1007_v12 }
 0x3ff   : > { %v1009_v14 = vmul.f32 1.442695, %v1008_v13  ;;  %v3664_v13 = vld [vmem:[%s4711_s10] ss:$8 sps:$4 sm:$0xff]  }
 0x400   : > { %v1070_v16 = vpop.permute.xlu1 %1069 }
 0x401   : > { %3802 = vpow2.f32 %v1009_v14  ;;  %v1075_v19 = vsel %vm957_vm1, %v1070_v16, 0  ;;  %v3666_v14 = vld [vmem:[%s4711_s10 + $0x4] ss:$8 sps:$4 sm:$0xff]  }
 0x402   : > { %v3672_v16 = vld [vmem:[%s4711_s10 + $0x24] ss:$8 sps:$4 sm:$0xff]  }
 0x40b   : > { %v3803_v15 = vpop.eup %3802 }
 0x40c   : > { %v1014_v17 = vpack.c.bf16 %v3803_v15, %v3803_v15  ;;  %v1011_v33 = vsel %vm1004_vm3, %v3803_v15, 0.0  ;;  %v3669_v15 = vld [vmem:[%s4711_s10 + $0x14] ss:$8 sps:$4 sm:$0xff]  }
 0x40e   : > { %3407 = vmatmul.mubr.msk.bf16.vlgmr.msra.gmra.mrb[8].mxu1 %vm1004_vm3, %v1014_v17  ;;  %v3670_v17 = vld [vmem:[%s4711_s10 + $0x20] ss:$8 sps:$4 sm:$0xff]  }
 0x40f   : > { %3411 = vmatpush3.bf16.xpose.msra.mxu1 %v1075_v19  ;;  %3412 = vmatprep.mubr.msk.bf16.mxu1 %vm4003_vm0, %v4001_v4 }
 0x410   : > { %3416 = vmatprep.subr.bf16.mxu1 %v4001_v4 }
 0x416   : > { %3413 = vmatmul.mubr.msk.bf16.vlgmr.msra.gmra.mrb[12].mxu1 %vm957_vm1, %v1067_v18 }
 0x417   : > { %3417 = vmatpush3.bf16.msra.mxu1 %v1134_v21  ;;  %3418 = vmatprep.mubr.msk.bf16.mxu1 %vm4003_vm0, %v4001_v4 }
 0x418   : > { %1435 = vmatprep.subr.bf16.mxu1 %v3666_v14 }
 0x4e1   : > { %v1056_v22 = vpop.f32.mrb[8].mxu1 }
 0x4e2   : > { %v3408_v23 = vpop.f32.mrb[9].mxu1 }
 0x4e3   : > { %v1059_v24 = vpop.f32.mrb[10].mxu1  ;;  %v3673_v23 = vld [vmem:[%s4711_s10 + $0x30] ss:$8 sps:$4 sm:$0xff]  }
 0x4e4   : > { %v3409_v25 = vpop.f32.mrb[11].mxu1  ;;  %v3678_v24 = vld [vmem:[%s4711_s10 + $0x44] ss:$8 sps:$4 sm:$0xff]  }
 0x4e5   : > { %v3676_v25 = vld [vmem:[%s4711_s10 + $0x40] ss:$8 sps:$4 sm:$0xff]  }
 0x4e9   : > { %v1111_v27 = vpop.f32.mrb[12].mxu1 }
 0x4ea   : > { %v1112_v28 = vadd.f32 %v4314_v5, %v1111_v27  ;;  %v3414_v29 = vpop.f32.mrb[13].mxu1  ;;  %v3681_v27 = vld [vmem:[%s4711_s10 + $0x54] ss:$8 sps:$4 sm:$0xff]  }
 0x4eb   : > { %v1114_v30 = vpop.f32.mrb[14].mxu1  ;;  %v3684_v29 = vld [vmem:[%s4711_s10 + $0x64] ss:$8 sps:$4 sm:$0xff]  }
 0x4ec   : > { %v3415_v31 = vpop.f32.mrb[15].mxu1  ;;  %v1117_v32 = vsel %vm1004_vm3, %v1112_v28, -inf  ;;  %v3682_v30 = vld [vmem:[%s4711_s10 + $0x60] ss:$8 sps:$4 sm:$0xff]  }
 0x4ed   : > { %1118 = vmax.xlane.f32.xlu1 %v1117_v32  ;;  %v3687_v31 = vld [vmem:[%s4711_s10 + $0x74] ss:$8 sps:$4 sm:$0xff]   ;;  %v3685_v32 = vld [vmem:[%s4711_s10 + $0x70] ss:$8 sps:$4 sm:$0xff]  }
 0x4f1   : > { %1012 = vadd.xlane.f32.xlu1 %v1011_v33 }
 0x57a   : > { %v1119_v34 = vpop.xlane.xlu1 %1118 }
 0x57b   : > { %v1120_v35 = vsub.f32 %v1112_v28, %v1119_v34  ;;  %v3679_v28 = vld [vmem:[%s4711_s10 + $0x50] ss:$8 sps:$4 sm:$0xff]  }
 0x57d   : > { %v1121_v36 = vmul.f32 1.442695, %v1120_v35 }
 0x57e   : > { %v1013_v61 = vpop.xlane.xlu1 %1012 }
 0x57f   : > { %3804 = vpow2.f32 %v1121_v36 }
 0x589   : > { %v3805_v37 = vpop.eup %3804 }
 0x58a   : > { %v1123_v38 = vsel %vm1004_vm3, %v3805_v37, 0.0  ;;  %v1126_v39 = vpack.c.bf16 %v3805_v37, %v3805_v37  ;;  %v3094_v37 = vld [vmem:[%s4709_s8] ss:$0 sm:$0xff] }
 0x58b   : > { %1124 = vadd.xlane.f32.xlu0 %v1123_v38 }
 0x58c   : > { %3419 = vmatmul.mubr.msk.bf16.vlgmr.msra.gmra.mrb[16].mxu1 %vm1004_vm3, %v1126_v39  ;;  %v3095_v39 = vld [vmem:[%s4710_s9] ss:$0 sm:$0xff] }
 0x58d   : > { %1467 = vmatprep.mubr.bf16.mxu1 %v4002_v26  ;;  %1436 = vmatpush1.bf16.msra.mxu1 %v3664_v13 }
 0x58e   : > { %1437 = vmatprep.subr.bf16.mxu1 %v3669_v15 }
 0x591   : > { %1438 = vmatpush1.bf16.msra.mxu1 %v3667_v41 }
 0x592   : > { %1439 = vmatprep.subr.bf16.mxu1 %v3672_v16 }
 0x595   : > { %1440 = vmatpush1.bf16.msra.mxu1 %v3670_v17 }
 0x618   : > { %v1125_v53 = vpop.xlane.xlu0 %1124 }
 0x619   : > { %3806 = vrcp.f32 %v1125_v53  ;;  %v3693_v53 = vld [vmem:[#allocation5 + $0x10] sm:$0xff]  }
 0x61a   : > { %3808 = vrcp.f32 %v1013_v61  ;;  %v3701_v61 = vld [vmem:[#allocation5 + $0x30] sm:$0xff]  }
 0x623   : > { %v3807_v54 = vpop.eup %3806 }
 0x624   : > { %v3809_v62 = vpop.eup %3808 }
 0x625   : > { %v1063_v63 = vmul.f32 %v3809_v62, %v1056_v22  ;;  %v3675_v22 = vld [vmem:[%s4711_s10 + $0x34] ss:$8 sps:$4 sm:$0xff]  }
 0x626   : > { %1441 = vmatprep.subr.bf16.mxu1 %v3675_v22  ;;  %v3702_v62 = vld [vmem:[#allocation5 + $0x78] sm:$0xff]  }
 0x627   : > { %v1064_v0 = vpack.c.bf16 %v1063_v63, %v1063_v63  ;;  %1442 = vmatpush1.bf16.msra.mxu1 %v3673_v23  ;;  %v3703_v63 = vld [vmem:[#allocation5 + $0x38] sm:$0xff]  }
 0x628   : > { %1443 = vmatprep.subr.bf16.mxu1 %v3678_v24 }
 0x62b   : > { %1444 = vmatpush1.bf16.msra.mxu1 %v3676_v25 }
 0x62c   : > { %1445 = vmatprep.subr.bf16.mxu1 %v3681_v27 }
 0x62f   : > { %1446 = vmatpush1.bf16.msra.mxu1 %v3679_v28 }
 0x630   : > { %1447 = vmatprep.subr.bf16.mxu1 %v3684_v29 }
 0x633   : > { %1448 = vmatpush1.bf16.msra.mxu1 %v3682_v30 }
 0x634   : > { %1449 = vmatprep.subr.bf16.mxu1 %v3687_v31 }
 0x637   : > { %1450 = vmatpush1.bf16.msra.mxu1 %v3685_v32  ;;  %v3112_v32 = vld [vmem:[%s4714_s13] ss:$0 sm:$0xff] }
 0x65f   : > { %v1170_v55 = vpop.f32.mrb[16].mxu1 }
 0x660   : > { %v1177_v56 = vmul.f32 %v3807_v54, %v1170_v55  ;;  %v3420_v57 = vpop.f32.mrb[17].mxu1  ;;  %v3694_v54 = vld [vmem:[#allocation5 + $0x58] sm:$0xff]  }
 0x661   : > { %v1173_v58 = vpop.f32.mrb[18].mxu1  ;;  %v3695_v55 = vld [vmem:[#allocation5 + $0x18] sm:$0xff]   ;;  %v3697_v57 = vld [vmem:[#allocation5 + $0x20] sm:$0xff]  }
 0x662   : > { %v1178_v59 = vpack.c.bf16 %v1177_v56, %v1177_v56  ;;  %v3421_v60 = vpop.f32.mrb[19].mxu1  ;;  %v3696_v56 = vld [vmem:[#allocation5 + $0x60] sm:$0xff]   ;;  %v3698_v58 = vld [vmem:[#allocation5 + $0x68] sm:$0xff]  }
 0x663   : > { %v3700_v60 = vld [vmem:[#allocation5 + $0x70] sm:$0xff]  }
 0x664   : > { %1180 = vrot.lane.b32.xlu1 %v1178_v59, %s4004_s3  ;;  %v3699_v59 = vld [vmem:[#allocation5 + $0x28] sm:$0xff]  }
 0x6d6   : > { %v1181_v1 = vpop.permute.xlu1 %1180 }
 0x6d7   : > { %v1184_v2 = vsel %vm957_vm1, %v1064_v0, %v1181_v1  ;;  %v1343_v0 = vld [vmem:[%s4712_s11] sm:$0x3] }
 0x6d8   : > { %3439 = vmatmul.mubr.bf16.vlgmr.msra.gmra.mrb[4].mxu0 %v1184_v2  ;;  %v1348_v1 = vrot.slane %v1343_v0, %v4288_v44  ;;  %v1352_v2 = vrot.slane %v1343_v0, %v4294_v46  ;;  %v3726_v0 = vld [vmem:[#allocation2 + $0x13c] ss:$12 sps:$4 sm:$0xff]  }
 0x6d9   : > { %3291 = vmatpush3.bf16.msra.mxu0 %v3689_v49  ;;  %v3710_v49 = vld [vmem:[#allocation2 + $0xdc] ss:$12 sps:$4 sm:$0xff]  }
 0x6da   : > { %3292 = vmatprep.subr.bf16.mxu0 %v3690_v50  ;;  %v3711_v50 = vld [vmem:[#allocation2 + $0xe0] ss:$12 sps:$4 sm:$0xff]  }
 0x6dd   : > { %3293 = vmatpush3.bf16.msra.mxu0 %v3691_v51  ;;  %v3708_v51 = vld [vmem:[#allocation2 + $0xd8] ss:$12 sps:$4 sm:$0xff]  }
 0x6de   : > { %3294 = vmatprep.subr.bf16.mxu0 %v3692_v52  ;;  %v3714_v52 = vld [vmem:[#allocation2 + $0xf4] ss:$12 sps:$4 sm:$0xff]  }
 0x6e1   : > { %3295 = vmatpush3.bf16.msra.mxu0 %v3693_v53  ;;  %v3712_v53 = vld [vmem:[#allocation2 + $0xf0] ss:$12 sps:$4 sm:$0xff]  }
 0x6e2   : > { %3296 = vmatprep.subr.bf16.mxu0 %v3694_v54 }
 0x6e5   : > { %3297 = vmatpush3.bf16.msra.mxu0 %v3695_v55 }
 0x6e6   : > { %3298 = vmatprep.subr.bf16.mxu0 %v3696_v56 }
 0x6e9   : > { %3299 = vmatpush3.bf16.msra.mxu0 %v3697_v57  ;;  %v3715_v57 = vld [vmem:[#allocation2 + $0xf8] ss:$12 sps:$4 sm:$0xff]  }
 0x6ea   : > { %3300 = vmatprep.subr.bf16.mxu0 %v3698_v58  ;;  %v3718_v58 = vld [vmem:[#allocation2 + $0x10c] ss:$12 sps:$4 sm:$0xff]  }
 0x6ed   : > { %3301 = vmatpush3.bf16.msra.mxu0 %v3699_v59  ;;  %v3716_v59 = vld [vmem:[#allocation2 + $0x108] ss:$12 sps:$4 sm:$0xff]  }
 0x6ee   : > { %3302 = vmatprep.subr.bf16.mxu0 %v3700_v60  ;;  %v3719_v60 = vld [vmem:[#allocation2 + $0x110] ss:$12 sps:$4 sm:$0xff]  }
 0x6f1   : > { %3303 = vmatpush3.bf16.msra.mxu0 %v3701_v61  ;;  %v3722_v61 = vld [vmem:[#allocation2 + $0x124] ss:$12 sps:$4 sm:$0xff]  }
 0x6f2   : > { %3304 = vmatprep.subr.bf16.mxu0 %v3702_v62  ;;  %v3720_v62 = vld [vmem:[#allocation2 + $0x120] ss:$12 sps:$4 sm:$0xff]  }
 0x6f5   : > { %3305 = vmatpush3.bf16.msra.mxu0 %v3703_v63  ;;  %v3723_v63 = vld [vmem:[#allocation2 + $0x128] ss:$12 sps:$4 sm:$0xff]  }
 0x6f6   : > { %3442 = vmatprep.subr.bf16.mxu0 %v4001_v4 }
 0x7ab   : > { %v1291_v6 = vpop.f32.mrb[4].mxu0 }
 0x7ac   : > { %v1292_v7 = vadd.f32 %v3085_v3, %v1291_v6  ;;  %v3440_v8 = vpop.f32.mrb[5].mxu0 }
 0x7ad   : > { %v1294_v10 = vpop.f32.mrb[6].mxu0 }
 0x7ae   : > { %v3441_v11 = vpop.f32.mrb[7].mxu0  ;;  %v1297_v12 = vadd.f32 %v1292_v7, %v688_v9 }
 0x7b0   : > { %1300 = vadd.xlane.f32.xlu0 %v1297_v12 }
 0x83d   : > { %v1301_v18 = vpop.xlane.xlu0 %1300 }
 0x83e   : > { %v1302_v19 = vmul.f32 0.0078125, %v1301_v18 }
 0x840   : > { %v1303_v20 = vsub.f32 %v1297_v12, %v1302_v19 }
 0x842   : > { %v1304_v21 = vmul.f32 %v1303_v20, %v1303_v20 }
 0x844   : > { %1305 = vadd.xlane.f32.xlu0 %v1304_v21 }
 0x8d1   : > { %v1306_v33 = vpop.xlane.xlu0 %1305 }
 0x8d2   : > { %v1307_v34 = vmul.f32 0.0078125, %v1306_v33 }
 0x8d4   : > { %v1308_v35 = vadd.f32 1e-12, %v1307_v34 }
 0x8d6   : > { %3810 = vrsqrt.f32 %v1308_v35 }
 0x8e0   : > { %v3811_v36 = vpop.eup %3810 }
 0x8e1   : > { %v1310_v38 = vmul.f32 %v3811_v36, %v1303_v20 }
 0x8e3   : > { %v1317_v40 = vmul.f32 %v3094_v37, %v1310_v38 }
 0x8e5   : > { %v1324_v42 = vadd.f32 %v3095_v39, %v1317_v40  ;;  %v3704_v40 = vld [vmem:[#allocation2 + $0xc0] ss:$12 sps:$4 sm:$0xff]  }
 0x8e7   : > { %v4425_v45 = vpack.c.bf16 %v1324_v42, %v1324_v42  ;;  %v3706_v42 = vld [vmem:[#allocation2 + $0xc4] ss:$12 sps:$4 sm:$0xff]  }
 0x8e8   : > { %1880 = vmatprep.subr.bf16.mxu1 %v3706_v42 }
 0x8e9   : > { %1468 = vmatmul.mubr.bf16.vlgmr.msra.gmra.mrb[20].mxu1 %v4425_v45  ;;  %v1326_v38 = vunpack.c.l.bf16 %v4425_v45 }
 0x8ea   : > { %1912 = vmatprep.mubr.bf16.mxu1 %v4002_v26  ;;  %1881 = vmatpush1.bf16.msra.mxu1 %v3704_v40 }
 0x8eb   : > { %1882 = vmatprep.subr.bf16.mxu1 %v3710_v49 }
 0x8ee   : > { %1883 = vmatpush1.bf16.msra.mxu1 %v3708_v51 }
 0x8ef   : > { %1884 = vmatprep.subr.bf16.mxu1 %v3714_v52 }
 0x8f2   : > { %1885 = vmatpush1.bf16.msra.mxu1 %v3712_v53 }
 0x8f3   : > { %1886 = vmatprep.subr.bf16.mxu1 %v3718_v58 }
 0x8f6   : > { %1887 = vmatpush1.bf16.msra.mxu1 %v3716_v59 }
 0x8f7   : > { %1888 = vmatprep.subr.bf16.mxu1 %v3722_v61 }
 0x8fa   : > { %1889 = vmatpush1.bf16.msra.mxu1 %v3720_v62 }
 0x8fb   : > { %1890 = vmatprep.subr.bf16.mxu1 %v3726_v0 }
 0x9bc   : > { %v1469_v3 = vpop.f32.mrb[20].mxu1 }
 0x9bd   : > { %v1470_v6 = vadd.f32 %v1469_v3, %v1348_v1  ;;  %v1471_v7 = vpop.f32.mrb[21].mxu1  ;;  %v3724_v1 = vld [vmem:[#allocation2 + $0x138] ss:$12 sps:$4 sm:$0xff]   ;;  %v3730_v3 = vld [vmem:[#allocation2 + $0x154] ss:$12 sps:$4 sm:$0xff]  }
 0x9be   : > { %v1472_v8 = vadd.f32 %v1471_v7, %v1352_v2  ;;  %v1473_v9 = vpop.f32.mrb[22].mxu1  ;;  %v3727_v2 = vld [vmem:[#allocation2 + $0x140] ss:$12 sps:$4 sm:$0xff]   ;;  %1891 = vmatpush1.bf16.msra.mxu1 %v3724_v1  ;;  %v3731_v7 = vld [vmem:[#allocation2 + $0x158] ss:$12 sps:$4 sm:$0xff]  }
 0x9bf   : > { %v1476_v10 = vmul.f32 %v1470_v6, %v1470_v6  ;;  %v1474_v11 = vpop.f32.mrb[23].mxu1  ;;  %1892 = vmatprep.subr.bf16.mxu1 %v3730_v3  ;;  %v3732_v9 = vld [vmem:[#allocation2 + $0x168] ss:$12 sps:$4 sm:$0xff]  }
 0x9c0   : > { %v1477_v12 = vmul.f32 %v1472_v8, %v1472_v8 }
 0x9c1   : > { %v1478_v13 = vmul.f32 %v1476_v10, %v1470_v6  ;;  %v3735_v10 = vld [vmem:[#allocation2 + $0x170] ss:$12 sps:$4 sm:$0xff]  }
 0x9c2   : > { %v1479_v14 = vmul.f32 %v1477_v12, %v1472_v8 }
 0x9c3   : > { %v1480_v15 = vmul.f32 0.044715, %v1478_v13 }
 0x9c4   : > { %v1481_v41 = vmul.f32 0.044715, %v1479_v14 }
 0x9c5   : > { %v1482_v16 = vadd.f32 %v1480_v15, %v1470_v6  ;;  %v3129_v15 = vld [vmem:[%s4715_s14] ss:$0 sm:$0xff] }
 0x9c6   : > { %v1483_v17 = vadd.f32 %v1481_v41, %v1472_v8 }
 0x9c7   : > { %v1484_v18 = vmul.f32 0.7978846, %v1482_v16  ;;  %v3130_v16 = vld [vmem:[%s4716_s15] ss:$0 sm:$0xff] }
 0x9c8   : > { %v1485_v19 = vmul.f32 0.7978846, %v1483_v17 }
 0x9c9   : > { %3812 = vtanh.f32 %v1484_v18 }
 0x9ca   : > { %3814 = vtanh.f32 %v1485_v19 }
 0x9d3   : > { %v3813_v20 = vpop.eup %3812 }
 0x9d4   : > { %v3815_v21 = vpop.eup %3814  ;;  %v1488_v22 = vadd.f32 1.0, %v3813_v20  ;;  %v3131_v20 = vld [vmem:[%s4706_s5 + $0x3] sm:$0x7] }
 0x9d5   : > { %v1489_v23 = vadd.f32 1.0, %v3815_v21  ;;  %v1740_v21 = vrot.slane %v3131_v20, %v4288_v44 }
 0x9d6   : > { %v1490_v24 = vmul.f32 0.5, %v1488_v22  ;;  %v1744_v22 = vrot.slane %v3131_v20, %v4294_v46 }
 0x9d7   : > { %v1491_v25 = vmul.f32 0.5, %v1489_v23 }
 0x9d8   : > { %v1492_v27 = vmul.f32 %v1490_v24, %v1470_v6  ;;  %v3728_v6 = vld [vmem:[#allocation2 + $0x150] ss:$12 sps:$4 sm:$0xff]  }
 0x9d9   : > { %v1493_v28 = vmul.f32 %v1491_v25, %v1472_v8  ;;  %v3734_v8 = vld [vmem:[#allocation2 + $0x16c] ss:$12 sps:$4 sm:$0xff]   ;;  %1893 = vmatpush1.bf16.msra.mxu1 %v3728_v6 }
 0x9da   : > { %v1494_v30 = vpack.c.bf16 %v1492_v27, %v1492_v27  ;;  %1894 = vmatprep.subr.bf16.mxu1 %v3734_v8 }
 0x9db   : > { %v1495_v29 = vpack.c.bf16 %v1493_v28, %v1493_v28 }
 0x9dd   : > { %1663 = vmatprep.mubr.bf16.mxu0 %v1495_v29  ;;  %1895 = vmatpush1.bf16.msra.mxu1 %v3732_v9  ;;  %v1748_v29 = vrot.slane %v3131_v20, %v733_v48  ;;  %v3742_v20 = vld [vmem:[%s4707_s6 + $0x70] sm:$0xff]  }
 0x9de   : > { %1664 = vmatmul.mubr.bf16.vlgmr.msra.gmra.mrb[8].mxu0 %v1494_v30  ;;  %3462 = vmatprep.subr.bf16.mxu1 %v4001_v4 }
 0x9df   : > { %3458 = vmatprep.mubr.msk.bf16.mxu0 %vm4003_vm0, %v4001_v4  ;;  %3443 = vmatpush3.bf16.msra.mxu0 %v3707_v47 }
 0x9e0   : > { %3444 = vmatprep.subr.bf16.mxu0 %v4001_v4 }
 0x9e3   : > { %3445 = vmatpush3.bf16.msra.mxu0 %v3711_v50 }
 0x9e4   : > { %3446 = vmatprep.subr.bf16.mxu0 %v4001_v4 }
 0x9e7   : > { %3447 = vmatpush3.bf16.msra.mxu0 %v3715_v57 }
 0x9e8   : > { %3448 = vmatprep.subr.bf16.mxu0 %v4001_v4 }
 0x9eb   : > { %3449 = vmatpush3.bf16.msra.mxu0 %v3719_v60 }
 0x9ec   : > { %3450 = vmatprep.subr.bf16.mxu0 %v4001_v4 }
 0x9ef   : > { %3451 = vmatpush3.bf16.msra.mxu0 %v3723_v63 }
 0x9f0   : > { %3452 = vmatprep.subr.bf16.mxu0 %v4001_v4 }
 0x9f3   : > { %3453 = vmatpush3.bf16.msra.mxu0 %v3727_v2 }
 0x9f4   : > { %3454 = vmatprep.subr.bf16.mxu0 %v4001_v4 }
 0x9f7   : > { %3455 = vmatpush3.bf16.msra.mxu0 %v3731_v7 }
 0x9f8   : > { %3456 = vmatprep.subr.bf16.mxu0 %v4001_v4 }
 0x9fb   : > { %3457 = vmatpush3.bf16.msra.mxu0 %v3735_v10 }
 0x9fc   : > { %3486 = vmatprep.subr.bf16.mxu0 %v4001_v4 }
 0xab1   : > { %v3306_v31 = vpop.f32.mrb[8].mxu0 }
 0xab2   : > { %v3307_v33 = vpop.f32.mrb[9].mxu0 }
 0xab3   : > { %v3308_v34 = vadd.f32 %v3307_v33, %v3306_v31  ;;  %v3309_v35 = vpop.f32.mrb[10].mxu0 }
 0xab4   : > { %v3310_v36 = vpop.f32.mrb[11].mxu0 }
 0xab5   : > { %v1666_v37 = vadd.f32 %v3308_v34, %v3112_v32 }
 0xab7   : > { %v1671_v39 = vadd.f32 %v1666_v37, %v1326_v38 }
 0xab9   : > { %1674 = vadd.xlane.f32.xlu0 %v1671_v39 }
 0xb46   : > { %v1675_v45 = vpop.xlane.xlu0 %1674 }
 0xb47   : > { %v1676_v54 = vmul.f32 0.0078125, %v1675_v45 }
 0xb49   : > { %v1677_v55 = vsub.f32 %v1671_v39, %v1676_v54 }
 0xb4b   : > { %v1678_v56 = vmul.f32 %v1677_v55, %v1677_v55 }
 0xb4d   : > { %1679 = vadd.xlane.f32.xlu0 %v1678_v56 }
 0xbda   : > { %v1680_v11 = vpop.xlane.xlu0 %1679 }
 0xbdb   : > { %v1681_v12 = vmul.f32 0.0078125, %v1680_v11 }
 0xbdd   : > { %v1682_v13 = vadd.f32 1e-12, %v1681_v12 }
 0xbdf   : > { %3816 = vrsqrt.f32 %v1682_v13 }
 0xbe9   : > { %v3817_v14 = vpop.eup %3816 }
 0xbea   : > { %v1684_v41 = vmul.f32 %v3817_v14, %v1677_v55 }
 0xbec   : > { %v1691_v17 = vmul.f32 %v3129_v15, %v1684_v41  ;;  %v3737_v41 = vld [vmem:[%s4707_s6 + $0x48] sm:$0xff]  }
 0xbee   : > { %v1698_v18 = vadd.f32 %v3130_v16, %v1691_v17  ;;  %v3738_v16 = vld [vmem:[%s4707_s6 + $0x50] sm:$0xff]   ;;  %v3740_v17 = vld [vmem:[%s4707_s6 + $0x60] sm:$0xff]  }
 0xbf0   : > { %v4456_v19 = vpack.c.bf16 %v1698_v18, %v1698_v18  ;;  %v3741_v18 = vld [vmem:[%s4707_s6 + $0x68] sm:$0xff]  }
 0xbf2   : > { %1913 = vmatmul.mubr.bf16.vlgmr.msra.gmra.mrb[24].mxu1 %v4456_v19  ;;  %3459 = vmatmul.mubr.bf16.vlgmr.msra.gmra.mrb[12].mxu0 %v4456_v19 }
 0xbf3   : > { %3464 = vmatprep.mubr.msk.bf16.mxu1 %vm4003_vm0, %v4001_v4  ;;  %3502 = vmatprep.mubr.msk.bf16.mxu0 %vm4003_vm0, %v4001_v4 }
 0xcc5   : > { %v1914_v23 = vpop.f32.mrb[24].mxu1  ;;  %v1955_v24 = vpop.f32.mrb[12].mxu0 }
 0xcc6   : > { %v1915_v25 = vadd.f32 %v1914_v23, %v1740_v21  ;;  %v1916_v27 = vpop.f32.mrb[25].mxu1  ;;  %v3460_v28 = vpop.f32.mrb[13].mxu0  ;;  %v1956_v37 = vadd.f32 %v1955_v24, %v1748_v29  ;;  %v3743_v21 = vld [vmem:[%s4707_s6 + $0x78] sm:$0xff]  }
 0xcc7   : > { %v1917_v30 = vadd.f32 %v1916_v27, %v1744_v22  ;;  %v1918_v31 = vpop.f32.mrb[26].mxu1  ;;  %v1958_v32 = vpop.f32.mrb[14].mxu0 }
 0xcc8   : > { %v1919_v33 = vpop.f32.mrb[27].mxu1  ;;  %v3461_v34 = vpop.f32.mrb[15].mxu0  ;;  %v1961_v35 = vmul.f32 0.125, %v1915_v25  ;;  %v1964_v40 = vpack.c.bf16 %v1956_v37, %v1956_v37  ;;  %v3177_v37 = vld [vmem:[%s4708_s7 + $0x1] ss:$0 sm:$0xff] }
 0xcc9   : > { %v1963_v36 = vpack.c.bf16 %v1917_v30, %v1917_v30 }
 0xcca   : > { %v1962_v39 = vpack.c.bf16 %v1961_v35, %v1961_v35  ;;  %v2025_v43 = vsel %vm1018_vm2, %v1964_v40, 0 }
 0xccb   : > { %v1969_v38 = vsel %vm957_vm1, %v1963_v36, 0  ;;  %2074 = vrot.lane.b32.xlu0 %v1963_v36, %s4004_s3 }
 0xccc   : > { %3463 = vmatpush3.bf16.xpose.msra.mxu1 %v1969_v38 }
 0xccd   : > { %3468 = vmatprep.subr.bf16.mxu1 %v4001_v4 }
 0xccf   : > { %2071 = vrot.lane.b32.xlu0 %v1962_v39, %s4004_s3 }
 0xcd3   : > { %3465 = vmatmul.mubr.msk.bf16.vlgmr.msra.gmra.mrb[28].mxu1 %vm957_vm1, %v1962_v39 }
 0xcd4   : > { %3469 = vmatpush3.bf16.msra.mxu1 %v2025_v43  ;;  %3470 = vmatprep.mubr.msk.bf16.mxu1 %vm4003_vm0, %v4001_v4  ;;  %v1700_v43 = vunpack.c.l.bf16 %v4456_v19  ;;  %v3747_v19 = vld [vmem:[%s4711_s10 + $0x90] ss:$8 sps:$4 sm:$0xff]  }
 0xcd5   : > { %3474 = vmatprep.subr.bf16.mxu1 %v4001_v4 }
 0xd3d   : > { %v2075_v55 = vpop.permute.xlu0 %2074 }
 0xd3e   : > { %v2080_v57 = vsel %vm957_vm1, %v2075_v55, 0 }
 0xd41   : > { %v2072_v59 = vpop.permute.xlu0 %2071 }
 0xda6   : > { %v2005_v48 = vpop.f32.mrb[28].mxu1 }
 0xda7   : > { %v2006_v42 = vadd.f32 %v4314_v5, %v2005_v48  ;;  %v3466_v47 = vpop.f32.mrb[29].mxu1 }
 0xda8   : > { %v2008_v49 = vpop.f32.mrb[30].mxu1 }
 0xda9   : > { %v3467_v50 = vpop.f32.mrb[31].mxu1  ;;  %v2011_v51 = vsel %vm1004_vm3, %v2006_v42, -inf  ;;  %v3744_v49 = vld [vmem:[%s4711_s10 + $0x80] ss:$8 sps:$4 sm:$0xff]  }
 0xdaa   : > { %2012 = vmax.xlane.f32.xlu1 %v2011_v51  ;;  %v3746_v50 = vld [vmem:[%s4711_s10 + $0x84] ss:$8 sps:$4 sm:$0xff]   ;;  %v3749_v51 = vld [vmem:[%s4711_s10 + $0x94] ss:$8 sps:$4 sm:$0xff]  }
 0xdbb   : > { %2133 = vrot.lane.b32.xlu1 %v1964_v40, %s4004_s3 }
 0xe37   : > { %v2013_v52 = vpop.xlane.xlu1 %2012 }
 0xe38   : > { %v2014_v53 = vsub.f32 %v2006_v42, %v2013_v52  ;;  %v3752_v52 = vld [vmem:[%s4711_s10 + $0xa4] ss:$8 sps:$4 sm:$0xff]  }
 0xe3a   : > { %v2015_v45 = vmul.f32 1.442695, %v2014_v53  ;;  %v3750_v53 = vld [vmem:[%s4711_s10 + $0xa0] ss:$8 sps:$4 sm:$0xff]  }
 0xe3b   : > { %v2134_v58 = vpop.permute.xlu1 %2133 }
 0xe3c   : > { %3818 = vpow2.f32 %v2015_v45  ;;  %v2139_v60 = vsel %vm1018_vm2, %v2134_v58, 0  ;;  %v3753_v58 = vld [vmem:[%s4711_s10 + $0xb0] ss:$8 sps:$4 sm:$0xff]  }
 0xe46   : > { %v3819_v54 = vpop.eup %3818 }
 0xe47   : > { %v2020_v56 = vpack.c.bf16 %v3819_v54, %v3819_v54  ;;  %v2017_v9 = vsel %vm1004_vm3, %v3819_v54, 0.0 }
 0xe49   : > { %3471 = vmatmul.mubr.msk.bf16.vlgmr.msra.gmra.mrb[32].mxu1 %vm1004_vm3, %v2020_v56 }
 0xe4a   : > { %3475 = vmatpush3.bf16.xpose.msra.mxu1 %v2080_v57  ;;  %3476 = vmatprep.mubr.msk.bf16.mxu1 %vm4003_vm0, %v4001_v4  ;;  %v3755_v57 = vld [vmem:[%s4711_s10 + $0xb4] ss:$8 sps:$4 sm:$0xff]  }
 0xe4b   : > { %3480 = vmatprep.subr.bf16.mxu1 %v4001_v4 }
 0xe51   : > { %3477 = vmatmul.mubr.msk.bf16.vlgmr.msra.gmra.mrb[36].mxu1 %vm957_vm1, %v2072_v59  ;;  %v3758_v59 = vld [vmem:[%s4711_s10 + $0xc4] ss:$8 sps:$4 sm:$0xff]  }
 0xe52   : > { %3481 = vmatpush3.bf16.msra.mxu1 %v2139_v60  ;;  %3482 = vmatprep.mubr.msk.bf16.mxu1 %vm4003_vm0, %v4001_v4  ;;  %v3756_v60 = vld [vmem:[%s4711_s10 + $0xc0] ss:$8 sps:$4 sm:$0xff]  }
 0xe53   : > { %2446 = vmatprep.subr.bf16.mxu1 %v3746_v50 }
 0xf1c   : > { %v2061_v61 = vpop.f32.mrb[32].mxu1 }
 0xf1d   : > { %v3472_v62 = vpop.f32.mrb[33].mxu1 }
 0xf1e   : > { %v2064_v63 = vpop.f32.mrb[34].mxu1  ;;  %v3759_v62 = vld [vmem:[%s4711_s10 + $0xd0] ss:$8 sps:$4 sm:$0xff]  }
 0xf1f   : > { %v3473_v0 = vpop.f32.mrb[35].mxu1  ;;  %v3764_v63 = vld [vmem:[%s4711_s10 + $0xe4] ss:$8 sps:$4 sm:$0xff]  }
 0xf20   : > { %v3762_v0 = vld [vmem:[%s4711_s10 + $0xe0] ss:$8 sps:$4 sm:$0xff]  }
 0xf24   : > { %v2116_v1 = vpop.f32.mrb[36].mxu1 }
 0xf25   : > { %v2117_v2 = vadd.f32 %v4314_v5, %v2116_v1  ;;  %v3478_v3 = vpop.f32.mrb[37].mxu1  ;;  %v3736_v5 = vld [vmem:[%s4707_s6 + $0x40] sm:$0xff]   ;;  %v3767_v1 = vld [vmem:[%s4711_s10 + $0xf4] ss:$8 sps:$4 sm:$0xff]  }
 0xf26   : > { %v2119_v6 = vpop.f32.mrb[38].mxu1  ;;  %3487 = vmatpush3.bf16.msra.mxu0 %v3736_v5  ;;  %v3769_v5 = vld [vmem:[#allocation5 + $0x80] sm:$0xff]  }
 0xf27   : > { %v3479_v7 = vpop.f32.mrb[39].mxu1  ;;  %v2122_v8 = vsel %vm1004_vm3, %v2117_v2, -inf  ;;  %3488 = vmatprep.subr.bf16.mxu0 %v4001_v4 }
 0xf28   : > { %2123 = vmax.xlane.f32.xlu0 %v2122_v8 }
 0xf2a   : > { %3489 = vmatpush3.bf16.msra.mxu0 %v3737_v41  ;;  %v3770_v41 = vld [vmem:[#allocation5 + $0xc8] sm:$0xff]  }
 0xf2b   : > { %3490 = vmatprep.subr.bf16.mxu0 %v4001_v4 }
 0xf2c   : > { %2018 = vadd.xlane.f32.xlu0 %v2017_v9  ;;  %v3188_v9 = vld [vmem:[%s4709_s8 + $0x1] ss:$0 sm:$0xff] }
 0xf2e   : > { %3491 = vmatpush3.bf16.msra.mxu0 %v3738_v16  ;;  %v3771_v16 = vld [vmem:[#allocation5 + $0x88] sm:$0xff]  }
 0xf2f   : > { %3492 = vmatprep.subr.bf16.mxu0 %v4001_v4 }
 0xfb5   : > { %v2124_v10 = vpop.xlane.xlu0 %2123 }
 0xfb6   : > { %v2125_v11 = vsub.f32 %v2117_v2, %v2124_v10  ;;  %v3765_v2 = vld [vmem:[%s4711_s10 + $0xf0] ss:$8 sps:$4 sm:$0xff]  }
 0xfb8   : > { %v2126_v12 = vmul.f32 1.442695, %v2125_v11  ;;  %v3189_v11 = vld [vmem:[%s4710_s9 + $0x1] ss:$0 sm:$0xff] }
 0xfb9   : > { %v2019_v31 = vpop.xlane.xlu0 %2018 }
 0xfba   : > { %3820 = vpow2.f32 %v2126_v12 }
 0xfc4   : > { %v3821_v13 = vpop.eup %3820 }
 0xfc5   : > { %v2128_v14 = vsel %vm1004_vm3, %v3821_v13, 0.0  ;;  %v2131_v15 = vpack.c.bf16 %v3821_v13, %v3821_v13 }
 0xfc6   : > { %2129 = vadd.xlane.f32.xlu1 %v2128_v14 }
 0xfc7   : > { %3483 = vmatmul.mubr.msk.bf16.vlgmr.msra.gmra.mrb[40].mxu1 %vm1004_vm3, %v2131_v15  ;;  %v3768_v15 = vld [vmem:[#allocation5 + $0xc0] sm:$0xff]  }
 0xfc8   : > { %2478 = vmatprep.mubr.bf16.mxu1 %v4002_v26  ;;  %v3739_v26 = vld [vmem:[%s4707_s6 + $0x58] sm:$0xff]   ;;  %2447 = vmatpush1.bf16.msra.mxu1 %v3744_v49 }
 0xfc9   : > { %3493 = vmatpush3.bf16.msra.mxu0 %v3739_v26  ;;  %2448 = vmatprep.subr.bf16.mxu1 %v3749_v51  ;;  %v3772_v26 = vld [vmem:[#allocation5 + $0xd0] sm:$0xff]  }
 0xfca   : > { %3494 = vmatprep.subr.bf16.mxu0 %v4001_v4 }
 0xfcc   : > { %2449 = vmatpush1.bf16.msra.mxu1 %v3747_v19 }
 0xfcd   : > { %3495 = vmatpush3.bf16.msra.mxu0 %v3740_v17  ;;  %2450 = vmatprep.subr.bf16.mxu1 %v3752_v52  ;;  %v3773_v17 = vld [vmem:[#allocation5 + $0x90] sm:$0xff]  }
 0xfce   : > { %3496 = vmatprep.subr.bf16.mxu0 %v4001_v4 }
 0xfd0   : > { %2451 = vmatpush1.bf16.msra.mxu1 %v3750_v53 }
 0xfd1   : > { %3497 = vmatpush3.bf16.msra.mxu0 %v3741_v18  ;;  %2452 = vmatprep.subr.bf16.mxu1 %v3755_v57  ;;  %v3774_v18 = vld [vmem:[#allocation5 + $0xd8] sm:$0xff]  }
 0xfd2   : > { %3498 = vmatprep.subr.bf16.mxu0 %v4001_v4 }
 0xfd4   : > { %2453 = vmatpush1.bf16.msra.mxu1 %v3753_v58 }
 0xfd5   : > { %3499 = vmatpush3.bf16.msra.mxu0 %v3742_v20  ;;  %2454 = vmatprep.subr.bf16.mxu1 %v3758_v59  ;;  %v3775_v20 = vld [vmem:[#allocation5 + $0x98] sm:$0xff]  }
 0xfd6   : > { %3500 = vmatprep.subr.bf16.mxu0 %v4001_v4 }
 0xfd8   : > { %2455 = vmatpush1.bf16.msra.mxu1 %v3756_v60  ;;  %v3224_v60 = vld [vmem:[%s4714_s13 + $0x1] ss:$0 sm:$0xff] }
 0xfd9   : > { %3501 = vmatpush3.bf16.msra.mxu0 %v3743_v21  ;;  %v3776_v21 = vld [vmem:[#allocation5 + $0xe0] sm:$0xff]  }
 0xfda   : > { %3338 = vmatprep.subr.bf16.mxu0 %v3768_v15  ;;  %v3789_v15 = vld [vmem:[#allocation7 + $0x28] sm:$0xff]  }
0x1053   : > { %v2130_v22 = vpop.xlane.xlu1 %2129 }
0x1054   : > { %3822 = vrcp.f32 %v2130_v22  ;;  %v3777_v22 = vld [vmem:[#allocation5 + $0xa0] sm:$0xff]  }
0x1055   : > { %3824 = vrcp.f32 %v2019_v31 }
0x105e   : > { %v3823_v23 = vpop.eup %3822 }
0x105f   : > { %v3825_v32 = vpop.eup %3824 }
0x1060   : > { %v2068_v33 = vmul.f32 %v3825_v32, %v2061_v61  ;;  %v3761_v61 = vld [vmem:[%s4711_s10 + $0xd4] ss:$8 sps:$4 sm:$0xff]  }
0x1061   : > { %2456 = vmatprep.subr.bf16.mxu1 %v3761_v61 }
0x1062   : > { %v2069_v34 = vpack.c.bf16 %v2068_v33, %v2068_v33  ;;  %2457 = vmatpush1.bf16.msra.mxu1 %v3759_v62 }
0x1063   : > { %2458 = vmatprep.subr.bf16.mxu1 %v3764_v63 }
0x1066   : > { %2459 = vmatpush1.bf16.msra.mxu1 %v3762_v0 }
0x1067   : > { %2460 = vmatprep.subr.bf16.mxu1 %v3767_v1 }
0x106a   : > { %2461 = vmatpush1.bf16.msra.mxu1 %v3765_v2 }
0x106b   : > { %3506 = vmatprep.subr.bf16.mxu1 %v4001_v4 }
0x109a   : > { %v2175_v24 = vpop.f32.mrb[40].mxu1 }
0x109b   : > { %v2182_v25 = vmul.f32 %v3823_v23, %v2175_v24  ;;  %v3484_v27 = vpop.f32.mrb[41].mxu1  ;;  %v3778_v23 = vld [vmem:[#allocation5 + $0xe8] sm:$0xff]  }
0x109c   : > { %v2178_v28 = vpop.f32.mrb[42].mxu1  ;;  %v3779_v24 = vld [vmem:[#allocation5 + $0xa8] sm:$0xff]   ;;  %v3781_v27 = vld [vmem:[#allocation5 + $0xb0] sm:$0xff]  }
0x109d   : > { %v2183_v29 = vpack.c.bf16 %v2182_v25, %v2182_v25  ;;  %v3485_v30 = vpop.f32.mrb[43].mxu1  ;;  %v3780_v25 = vld [vmem:[#allocation5 + $0xf0] sm:$0xff]   ;;  %v3782_v28 = vld [vmem:[#allocation5 + $0xf8] sm:$0xff]  }
0x109e   : > { %v3206_v30 = vld [vmem:[%s4712_s11 + $0x2] sm:$0x3] }
0x109f   : > { %2185 = vrot.lane.b32.xlu0 %v2183_v29, %s4004_s3  ;;  %v3783_v29 = vld [vmem:[#allocation5 + $0xb8] sm:$0xff]   ;;  %v2359_v31 = vrot.slane %v3206_v30, %v4288_v44  ;;  %v2363_v32 = vrot.slane %v3206_v30, %v4294_v46  ;;  %s2948_s3 = sshll.u32 %s647_s17, 4  ;;  %s4661_s3 = int_to_ptr.vmem [resolvable:$true] %s2948_s3 }
0x10a0   : > { %s3922_s20 = scalar_lea.vmem %s4661_s3, 16  ;;  %p3929_p4 = scmp.lt.s32.totalorder %s4661_s3, %s3927_s29 }
0x10a1   : > { %p3923_p12 = scmp.ne.s32.totalorder %s4661_s3, %s3922_s20  ;;  %p3930_p7 = scmp.lt.s32.totalorder %s3928_s24, %s3922_s20 }
0x10a3   : > { %p3924_p2 = pnand %p3923_p12, %p4773_p1  ;;  %p3931_p8 = por %p3930_p7, %p3929_p4 }
0x10a5   : > { %p3925_p3 = pneg %p3924_p2 }
0x10a7   : > { %p3932_p11 = pnand %p3931_p8, %p3925_p3 }
0x1111   : > { %v2186_v35 = vpop.permute.xlu0 %2185 }
0x1112   : > { %v2189_v36 = vsel %vm957_vm1, %v2069_v34, %v2186_v35 }
0x1113   : > { %3503 = vmatmul.mubr.bf16.vlgmr.msra.gmra.mrb[16].mxu0 %v2189_v36 }
0x1114   : > { %3339 = vmatpush3.bf16.msra.mxu0 %v3769_v5  ;;  %v3790_v5 = vld [vmem:[#allocation7 + $0x30] sm:$0xff]  }
0x1115   : > { %3340 = vmatprep.subr.bf16.mxu0 %v3770_v41  ;;  %v3791_v41 = vld [vmem:[#allocation7 + $0x38] sm:$0xff]  }
0x1118   : > { %3341 = vmatpush3.bf16.msra.mxu0 %v3771_v16  ;;  %v3792_v16 = vld [vmem:[%s4719_s18] sm:$0xff]  }
0x1119   : > { %3342 = vmatprep.subr.bf16.mxu0 %v3772_v26  ;;  %v3793_v26 = vld [vmem:[%s4719_s18 + $0x8] sm:$0xff]  }
0x111c   : > { %3343 = vmatpush3.bf16.msra.mxu0 %v3773_v17  ;;  %v3794_v17 = vld [vmem:[%s4719_s18 + $0x10] sm:$0xff]  }
0x111d   : > { %3344 = vmatprep.subr.bf16.mxu0 %v3774_v18  ;;  %v3795_v18 = vld [vmem:[%s4719_s18 + $0x18] sm:$0xff]  }
0x1120   : > { %3345 = vmatpush3.bf16.msra.mxu0 %v3775_v20 }
0x1121   : > { %3346 = vmatprep.subr.bf16.mxu0 %v3776_v21 }
0x1124   : > { %3347 = vmatpush3.bf16.msra.mxu0 %v3777_v22 }
0x1125   : > { %3348 = vmatprep.subr.bf16.mxu0 %v3778_v23 }
0x1128   : > { %3349 = vmatpush3.bf16.msra.mxu0 %v3779_v24  ;;  %v3243_v24 = vld [vmem:[%s4715_s14 + $0x1] ss:$0 sm:$0xff] }
0x1129   : > { %3350 = vmatprep.subr.bf16.mxu0 %v3780_v25 }
0x112c   : > { %3351 = vmatpush3.bf16.msra.mxu0 %v3781_v27  ;;  %v3244_v27 = vld [vmem:[%s4716_s15 + $0x1] ss:$0 sm:$0xff] }
0x112d   : > { %3352 = vmatprep.subr.bf16.mxu0 %v3782_v28 }
0x1130   : > { %3353 = vmatpush3.bf16.msra.mxu0 %v3783_v29 }
0x1131   : > { %3526 = vmatprep.subr.bf16.mxu0 %v4001_v4 }
0x11e6   : > { %v2298_v38 = vpop.f32.mrb[16].mxu0 }
0x11e7   : > { %v2299_v39 = vadd.f32 %v3177_v37, %v2298_v38  ;;  %v3504_v40 = vpop.f32.mrb[17].mxu0 }
0x11e8   : > { %v2301_v48 = vpop.f32.mrb[18].mxu0 }
0x11e9   : > { %v3505_v42 = vpop.f32.mrb[19].mxu0  ;;  %v2304_v47 = vadd.f32 %v2299_v39, %v1700_v43 }
0x11eb   : > { %2309 = vadd.xlane.f32.xlu0 %v2304_v47 }
0x1278   : > { %v2310_v45 = vpop.xlane.xlu0 %2309 }
0x1279   : > { %v2311_v54 = vmul.f32 0.0078125, %v2310_v45 }
0x127b   : > { %v2312_v55 = vsub.f32 %v2304_v47, %v2311_v54 }
0x127d   : > { %v2313_v56 = vmul.f32 %v2312_v55, %v2312_v55 }
0x127f   : > { %2314 = vadd.xlane.f32.xlu1 %v2313_v56 }
0x130c   : > { %v2315_v3 = vpop.xlane.xlu1 %2314 }
0x130d   : > { %v2316_v6 = vmul.f32 0.0078125, %v2315_v3 }
0x130f   : > { %v2317_v7 = vadd.f32 1e-12, %v2316_v6  ;;  %v3784_v6 = vld [vmem:[#allocation7] sm:$0xff]  }
0x1311   : > { %3826 = vrsqrt.f32 %v2317_v7  ;;  %v3785_v7 = vld [vmem:[#allocation7 + $0x8] sm:$0xff]  }
0x131b   : > { %v3827_v8 = vpop.eup %3826 }
0x131c   : > { %v2319_v10 = vmul.f32 %v3827_v8, %v2312_v55 }
0x131e   : > { %v2326_v12 = vmul.f32 %v3188_v9, %v2319_v10 }
0x1320   : > { %v2333_v13 = vadd.f32 %v3189_v11, %v2326_v12  ;;  %v3786_v12 = vld [vmem:[#allocation7 + $0x10] sm:$0xff]  }
0x1322   : > { %v4590_v14 = vpack.c.bf16 %v2333_v13, %v2333_v13  ;;  %v3787_v13 = vld [vmem:[#allocation7 + $0x18] sm:$0xff]  }
0x1324   : > { %2479 = vmatmul.mubr.bf16.vlgmr.msra.gmra.mrb[44].mxu1 %v4590_v14  ;;  %v2335_v2 = vunpack.c.l.bf16 %v4590_v14  ;;  %v3788_v14 = vld [vmem:[#allocation7 + $0x20] sm:$0xff]  }
0x1325   : > { %3522 = vmatprep.mubr.msk.bf16.mxu1 %vm4003_vm0, %v4001_v4  ;;  %3507 = vmatpush3.bf16.msra.mxu1 %v3784_v6 }
0x1326   : > { %3508 = vmatprep.subr.bf16.mxu1 %v4001_v4 }
0x1329   : > { %3509 = vmatpush3.bf16.msra.mxu1 %v3785_v7 }
0x132a   : > { %3510 = vmatprep.subr.bf16.mxu1 %v4001_v4 }
0x132d   : > { %3511 = vmatpush3.bf16.msra.mxu1 %v3786_v12 }
0x132e   : > { %3512 = vmatprep.subr.bf16.mxu1 %v4001_v4 }
0x1331   : > { %3513 = vmatpush3.bf16.msra.mxu1 %v3787_v13 }
0x1332   : > { %3514 = vmatprep.subr.bf16.mxu1 %v4001_v4 }
0x1335   : > { %3515 = vmatpush3.bf16.msra.mxu1 %v3788_v14 }
0x1336   : > { %3516 = vmatprep.subr.bf16.mxu1 %v4001_v4 }
0x1339   : > { %3517 = vmatpush3.bf16.msra.mxu1 %v3789_v15 }
0x133a   : > { %3518 = vmatprep.subr.bf16.mxu1 %v4001_v4 }
0x133d   : > { %3519 = vmatpush3.bf16.msra.mxu1 %v3790_v5 }
0x133e   : > { %3520 = vmatprep.subr.bf16.mxu1 %v4001_v4 }
0x1341   : > { %3521 = vmatpush3.bf16.msra.mxu1 %v3791_v41 }
0x13f7   : > { %v2480_v33 = vpop.f32.mrb[44].mxu1 }
0x13f8   : > { %v2481_v34 = vadd.f32 %v2480_v33, %v2359_v31  ;;  %v2482_v35 = vpop.f32.mrb[45].mxu1  ;;  %v3796_v31 = vld [vmem:[%s4719_s18 + $0x20] sm:$0xff]   ;;  %v3798_v33 = vld [vmem:[%s4719_s18 + $0x30] sm:$0xff]  }
0x13f9   : > { %v2483_v36 = vadd.f32 %v2482_v35, %v2363_v32  ;;  %v2484_v37 = vpop.f32.mrb[46].mxu1  ;;  %v3797_v32 = vld [vmem:[%s4719_s18 + $0x28] sm:$0xff]   ;;  %v2731_v35 = vld [vmem:[%s4768_s12] sm:$0x1] }
0x13fa   : > { %v2487_v38 = vmul.f32 %v2481_v34, %v2481_v34  ;;  %v2485_v39 = vpop.f32.mrb[47].mxu1 }
0x13fb   : > { %v2488_v40 = vmul.f32 %v2483_v36, %v2483_v36 }
0x13fc   : > { %v2489_v43 = vmul.f32 %v2487_v38, %v2481_v34 }
0x13fd   : > { %v2490_v48 = vmul.f32 %v2488_v40, %v2483_v36 }
0x13fe   : > { %v2491_v42 = vmul.f32 0.044715, %v2489_v43 }
0x13ff   : > { %v2492_v47 = vmul.f32 0.044715, %v2490_v48 }
0x1400   : > { %v2493_v49 = vadd.f32 %v2491_v42, %v2481_v34 }
0x1401   : > { %v2494_v50 = vadd.f32 %v2492_v47, %v2483_v36 }
0x1402   : > { %v2495_v51 = vmul.f32 0.7978846, %v2493_v49 }
0x1403   : > { %v2496_v19 = vmul.f32 0.7978846, %v2494_v50 }
0x1404   : > { %3828 = vtanh.f32 %v2495_v51 }
0x1405   : > { %3830 = vtanh.f32 %v2496_v19 }
0x140e   : > { %v3829_v44 = vpop.eup %3828 }
0x140f   : > { %v3831_v46 = vpop.eup %3830  ;;  %v2499_v52 = vadd.f32 1.0, %v3829_v44 }
0x1410   : > { %v2500_v53 = vadd.f32 1.0, %v3831_v46 }
0x1411   : > { %v2501_v45 = vmul.f32 0.5, %v2499_v52 }
0x1412   : > { %v2502_v54 = vmul.f32 0.5, %v2500_v53 }
0x1413   : > { %v2503_v55 = vmul.f32 %v2501_v45, %v2481_v34  ;;  %v3799_v34 = vld [vmem:[%s4719_s18 + $0x38] sm:$0xff]  }
0x1414   : > { %v2504_v56 = vmul.f32 %v2502_v54, %v2483_v36 }
0x1415   : > { %v2505_v58 = vpack.c.bf16 %v2503_v55, %v2503_v55 }
0x1416   : > { %v2506_v57 = vpack.c.bf16 %v2504_v56, %v2504_v56 }
0x1418   : > { %2676 = vmatprep.mubr.bf16.mxu0 %v2506_v57 }
0x1419   : > { %2677 = vmatmul.mubr.bf16.vlgmr.msra.gmra.mrb[20].mxu0 %v2505_v58 }
0x141a   : > { %3542 = vmatprep.mubr.msk.bf16.mxu0 %vm4003_vm0, %v4001_v4  ;;  %3527 = vmatpush3.bf16.msra.mxu0 %v3792_v16 }
0x141b   : > { %3528 = vmatprep.subr.bf16.mxu0 %v4001_v4 }
0x141e   : > { %3529 = vmatpush3.bf16.msra.mxu0 %v3793_v26 }
0x141f   : > { %3530 = vmatprep.subr.bf16.mxu0 %v4001_v4 }
0x1422   : > { %3531 = vmatpush3.bf16.msra.mxu0 %v3794_v17 }
0x1423   : > { %3532 = vmatprep.subr.bf16.mxu0 %v4001_v4 }
0x1426   : > { %3533 = vmatpush3.bf16.msra.mxu0 %v3795_v18 }
0x1427   : > { %3534 = vmatprep.subr.bf16.mxu0 %v4001_v4 }
0x142a   : > { %3535 = vmatpush3.bf16.msra.mxu0 %v3796_v31 }
0x142b   : > { %3536 = vmatprep.subr.bf16.mxu0 %v4001_v4 }
0x142e   : > { %3537 = vmatpush3.bf16.msra.mxu0 %v3797_v32 }
0x142f   : > { %3538 = vmatprep.subr.bf16.mxu0 %v4001_v4 }
0x1432   : > { %3539 = vmatpush3.bf16.msra.mxu0 %v3798_v33 }
0x1433   : > { %3540 = vmatprep.subr.bf16.mxu0 %v4001_v4 }
0x1436   : > { %3541 = vmatpush3.bf16.msra.mxu0 %v3799_v34 }
0x14ec   : > { %v3354_v59 = vpop.f32.mrb[20].mxu0 }
0x14ed   : > { %v3355_v61 = vpop.f32.mrb[21].mxu0 }
0x14ee   : > { %v3356_v62 = vadd.f32 %v3355_v61, %v3354_v59  ;;  %v3357_v63 = vpop.f32.mrb[22].mxu0 }
0x14ef   : > { %v3358_v0 = vpop.f32.mrb[23].mxu0 }
0x14f0   : > { %v2679_v1 = vadd.f32 %v3356_v62, %v3224_v60 }
0x14f2   : > { %v2684_v3 = vadd.f32 %v2679_v1, %v2335_v2 }
0x14f4   : > { %2689 = vadd.xlane.f32.xlu1 %v2684_v3 }
0x1581   : > { %v2690_v8 = vpop.xlane.xlu1 %2689 }
0x1582   : > { %v2691_v9 = vmul.f32 0.0078125, %v2690_v8 }
0x1584   : > { %v2692_v10 = vsub.f32 %v2684_v3, %v2691_v9 }
0x1586   : > { %v2693_v11 = vmul.f32 %v2692_v10, %v2692_v10 }
0x1588   : > { %2694 = vadd.xlane.f32.xlu1 %v2693_v11 }
0x1615   : > { %v2695_v20 = vpop.xlane.xlu1 %2694 }
0x1616   : > { %v2696_v21 = vmul.f32 0.0078125, %v2695_v20 }
0x1618   : > { %v2697_v22 = vadd.f32 1e-12, %v2696_v21 }
0x161a   : > { %3832 = vrsqrt.f32 %v2697_v22 }
0x1624   : > { %v3833_v23 = vpop.eup %3832 }
0x1625   : > { %v2699_v25 = vmul.f32 %v3833_v23, %v2692_v10 }
0x1627   : > { %v2706_v28 = vmul.f32 %v3243_v24, %v2699_v25 }
0x1629   : > { %v2713_v29 = vadd.f32 %v3244_v27, %v2706_v28 }
0x162b   : > { %v2714_v30 = vpack.c.bf16 %v2713_v29, %v2713_v29 }
0x162d   : > { %3523 = vmatmul.mubr.bf16.vlgmr.msra.gmra.mrb[48].mxu1 %v2714_v30 }
0x1700   : > { %v2814_v36 = vpop.f32.mrb[48].mxu1 }
0x1701   : > { %v2815_v37 = vadd.f32 %v2814_v36, %v2731_v35  ;;  %v3524_v38 = vpop.f32.mrb[49].mxu1 }
0x1702   : > { %v2817_v39 = vpop.f32.mrb[50].mxu1 }
0x1703   : > { %3834 = vtanh.f32 %v2815_v37  ;;  %v3525_v40 = vpop.f32.mrb[51].mxu1 }
0x170d   : > { %v3835_v43 = vpop.eup %3834 }
0x170e   : > { %v2821_v48 = vpack.c.bf16 %v3835_v43, %v3835_v43 }
0x1710   : > { %3543 = vmatmul.mubr.bf16.vlgmr.msra.gmra.mrb[24].mxu0 %v2821_v48 }
0x17e3   : > { %v2920_v4 = vpop.f32.mrb[24].mxu0 }
0x17e4   : > { %v2926_v42 = vmul.f32 %v2920_v4, %v2920_v4  ;;  %v3544_v47 = vpop.f32.mrb[25].mxu0 }
0x17e5   : > { %v2923_v49 = vpop.f32.mrb[26].mxu0 }
0x17e6   : > { %v3545_v50 = vpop.f32.mrb[27].mxu0  ;;  %v2928_v51 = vsel %vm2927_vm4, %v2926_v42, 0.0 }
0x17e7   : > { %2929 = vadd.xlane.f32.xlu1 %v2928_v51 }
0x1874   : > { %v2930_v19 = vpop.xlane.xlu1 %2929 }
0x1875   : > { %v2931_v44 = vmax.f32 %v2930_v19, 1e-24 }
0x1877   : > { %3836 = vrsqrt.f32 %v2931_v44 }
0x1881   : > { %v3837_v46 = vpop.eup %3836 }
0x1882   : > { %v2933_v52 = vmul.f32 %v3837_v46, %v2920_v4 }
0x1884   : > { %2934 = vst [vmem:[%s647_s17] sm:$0x1] %v2933_v52 }
0x1885   : > { %3935 = shalt.err (!%p3932_p11)
}
0x1886   : > { %s3936_s0 = scalar_lea.hbm %s4659_s26, 16  ;;  %s3940_s28 = scalar_lea.hbm %s4772_s2, 32 }
0x1887   : > { %p3937_p5 = scmp.ne.s32.totalorder %s4659_s26, %s3936_s0  ;;  %p3941_p9 = scmp.lt.u32.totalorder %s4659_s26, %s4772_s2 }
0x1888   : > { %p3942_p10 = scmp.lt.u32.totalorder %s3940_s28, %s3936_s0  ;;  %p3944_p12 = scmp.lt.u32.totalorder %s3936_s0, %s4659_s26 }
0x1889   : > { %p3938_p0 = pnand %p3937_p5, %p4773_p1 }
0x188a   : > { %p3943_p13 = por %p3942_p10, %p3941_p9 }
0x188b   : > { %p3939_p6 = pneg %p3938_p0 }
0x188c   : > { %p3945_p2 = por %p3944_p12, %p3943_p13 }
0x188e   : > { %p3946_p3 = pnand %p3945_p2, %p3939_p6 }
0x1890   : > { %3949 = shalt.err (!%p3946_p3)
}
0x1891   : > { %3558 = dma.vmem_to_hbm [thread:$0]  (%p4773_p1), %s4661_s3, 16, %s4659_s26, %s2936_s23  }
0x1892 PF: > { %s4774_s19 = sld [smem:[#allocation15_spill]]  ;;  %s4775_s30 = sld [smem:[#allocation12_spill]] }
0x1893   : > { %s4776_s21 = sld [smem:[#allocation19_spill]] }
0x1898   : > { %p3580_p4 = scmp.ge.s32.totalorder %s4774_s19, 2  ;;  %s2960_s20 = sand.u32 1, %s4775_s30  }
0x1899   : > { %p4777_p7 = scmp.ne.s32.totalorder %s4776_s21, 0  ;;  %s2961_s1 = scalar_lea.sflag [#allocation4], %s2960_s20 }
0x189b   : > { %p3571_p8 = pnand %p3580_p4, %p4777_p7 }
0x189d   : > { %3975 = dma.done.wait (!%p3571_p8), %s2961_s1, 16  }
0x189e   : > { %3977 = vsyncadd (!%p3571_p8), %s2961_s1, 4294967280  ;;  %s4778_s21 = sld [smem:[#allocation16_spill]]  ;;  %s4779_s0 = sld [smem:[#allocation13_spill]] }
0x189f   : > { %s4780_s30 = sld [smem:[#allocation14_spill]]  ;;  %s4781_s20 = sld [smem:[#allocation17_spill]] }
0x18a4   : > { %p31_p11 = scmp.ge.s32.totalorder %s4778_s21, 4  }
0x18a6   :  { %33 = sbr.rel (!%p31_p11) target bundleno = 13 (0xd), region = 159 }
0x18ad   :  { %2965 = vsyncpa [#allocation3], 1 }
0x18ae   :  { %2967 = vsyncpa [#allocation3 + $0x1], 1 }
0x18af   :  { %2968 = vsyncpa [#allocation6], 1 }
0x18b0   :  { %2969 = vsyncpa [#allocation4], 1 }
0x18b1   :  { %2971 = vsyncpa [#allocation4 + $0x1], 1 }

</bundles_post_ra>
